<compile_context>
chip_gen: v7x
topology: tpu7x:2x2x1
jax: 0.10.0
libtpu: 0.0.40
codegen_flags: <defaults>
</compile_context>

<pallas_src>
import jax
import jax.numpy as jnp
from jax import lax
from jax.experimental import pallas as pl
from jax.experimental.pallas import tpu as pltpu

LANES = 128       # padded feature width (lane-dense)
EDGE_TILE = 256   # edges processed per grid step (fills 256-wide MXU on v6e/v7x)


# ------------------------------- Pallas kernel --------------------------------

def _edgegcn3_sum_kernel(
    x_hbm_ref, e_ref, idx_ref, bat_ref,
    ee_w1_ref, ee_b1_ref, ee_w2_ref, ee_b2_ref,
    gc_w_ref, gc_b_ref,
    out_ref,
    h_ref, sup_ref, acc_ref,
):
    l = pl.program_id(0)            # layer index (sequential)
    t = pl.program_id(1)            # edge tile index (reduction axis, last)
    n_tiles = pl.num_programs(1)
    n_nodes = h_ref.shape[0]
    te = e_ref.shape[0]

    # -------- per-layer init (first edge tile): support = h @ W_l, zero acc --------
    @pl.when(t == 0)
    def _():
        @pl.when(l == 0)
        def _():
            # x is read exactly once: DMA HBM -> persistent bf16 node-state scratch.
            pltpu.sync_copy(x_hbm_ref, h_ref)
        sup_ref[...] = jnp.dot(h_ref[...], gc_w_ref[0],
                               preferred_element_type=jnp.float32).astype(jnp.bfloat16)
        acc_ref[...] = jnp.zeros_like(acc_ref)

    # -------- edge encoder MLP for this layer's edge tile (bf16 MXU, f32 VPU) --------
    e_tile = e_ref[...]                                               # (te, D) bf16
    eh = jnp.maximum(
        jnp.dot(e_tile, ee_w1_ref[0], preferred_element_type=jnp.float32)
        + ee_b1_ref[0], 0.0)                                          # (te, D) f32
    ef = jax.nn.sigmoid(
        jnp.dot(eh.astype(jnp.bfloat16), ee_w2_ref[0],
                preferred_element_type=jnp.float32) + ee_b2_ref[0])   # (te, D) f32

    # -------- shared one-hot machinery: one iota, two compares, bool->bf16 casts -----
    # src/tgt are lane-dense (1, te); padded entries are -1 so they match no node.
    src = idx_ref[0:1, :]                                             # (1, te) int32
    tgt = idx_ref[1:2, :]                                             # (1, te) int32
    node_iota = lax.broadcasted_iota(jnp.int32, (n_nodes, te), 0)     # (N, te)
    gather_oh = (node_iota == src).astype(jnp.bfloat16)               # (N, te)
    scatter_oh = (node_iota == tgt).astype(jnp.bfloat16)              # (N, te)

    # -------- gather source-node rows of `support`: e_sup = gather_oh^T @ support ----
    # TODO(synk): for very large N (N >> 128) replace this O(E*N*D) one-hot gather with
    # a true row gather / node-tiled formulation; kept for small-N robustness.
    e_sup = lax.dot_general(gather_oh, sup_ref[...],
                            dimension_numbers=(((0,), (0,)), ((), ())),
                            preferred_element_type=jnp.float32)       # (te, D) f32

    # -------- gate by edge features, scatter-add to target nodes --------
    gated = (e_sup * ef).astype(jnp.bfloat16)                         # (te, D)
    acc_ref[...] += jnp.dot(scatter_oh, gated,
                            preferred_element_type=jnp.float32)       # (N, D) f32

    # -------- per-layer finalize (last edge tile): bias, ReLU, readout --------
    @pl.when(t == n_tiles - 1)
    def _():
        y = acc_ref[...] + gc_b_ref[0]                                # (N, D) f32

        @pl.when(l < 2)
        def _():
            # TODO(synk): dropout is a no-op (p=0 / eval); add pltpu.prng_* masking
            # if training-mode dropout with p>0 is ever required.
            h_ref[...] = jnp.maximum(y, 0.0).astype(jnp.bfloat16)

        @pl.when(l == 2)
        def _():
            # per-graph sum pooling: scatter_add over batch assignment (-1 = padded node)
            bat = bat_ref[...]                                        # (1, N) int32
            n_graphs = out_ref.shape[0]
            pool_oh = (lax.broadcasted_iota(jnp.int32, (n_graphs, n_nodes), 0)
                       == bat).astype(jnp.bfloat16)                   # (B, N)
            out_ref[...] = jnp.dot(pool_oh, y.astype(jnp.bfloat16),
                                   preferred_element_type=jnp.float32)
            # type == 'regression' -> no log_softmax


# ---------------------------------- wrapper ------------------------------------

def _round_up(v, m):
    return (v + m - 1) // m * m


def _pad2(a, rows, cols, dtype):
    out = jnp.zeros((rows, cols), dtype)
    return out.at[: a.shape[0], : a.shape[1]].set(a.astype(dtype))


def _vmem_limit_bytes():
    # v5e/v6e have 128 MiB physical VMEM -> allow 96 MiB; v7x has 64 MiB -> 48 MiB.
    try:
        cap = pltpu.get_tpu_info().vmem_capacity_bytes
    except Exception:
        cap = 64 * 1024 * 1024
    return 96 * 1024 * 1024 if cap >= 128 * 1024 * 1024 else 48 * 1024 * 1024


def edgegcn3_sum_forward(params, node_feat, edge_feat, esrc, etgt, batch, num_graphs):
    (ee1_w1, ee1_b1, ee1_w2, ee1_b2,
     ee2_w1, ee2_b1, ee2_w2, ee2_b2,
     ee3_w1, ee3_b1, ee3_w2, ee3_b2,
     gc1_w, gc1_b, gc2_w, gc2_b, gc3_w, gc3_b) = params

    n, e_cnt = node_feat.shape[0], edge_feat.shape[0]
    out_features = gc3_w.shape[1]
    d = LANES
    n_p = _round_up(max(n, 128), 128)            # 128-aligned: lane-dense node axis
    e_p = _round_up(max(e_cnt, EDGE_TILE), EDGE_TILE)
    b_p = _round_up(max(num_graphs, 8), 8)

    # ---- host-side padding / packing: zero-pad all feature dims to 128 lanes ----
    x_p = _pad2(node_feat, n_p, d, jnp.bfloat16)
    ef_p = _pad2(edge_feat, e_p, d, jnp.bfloat16)
    # src/tgt packed lane-dense in a single (2, E) int32 array; -1 marks padded edges.
    idx_p = jnp.full((2, e_p), -1, jnp.int32)
    idx_p = idx_p.at[0, :e_cnt].set(esrc.astype(jnp.int32))
    idx_p = idx_p.at[1, :e_cnt].set(etgt.astype(jnp.int32))
    bat_p = jnp.full((1, n_p), -1, jnp.int32).at[0, :n].set(batch.astype(jnp.int32))

    def stack_w(ws):
        return jnp.stack([_pad2(w, d, d, jnp.bfloat16) for w in ws])      # (3, D, D)

    def stack_b(bs):
        return jnp.stack([_pad2(b, 1, d, jnp.float32) for b in bs])       # (3, 1, D)

    ee_w1 = stack_w((ee1_w1, ee2_w1, ee3_w1))
    ee_b1 = stack_b((ee1_b1, ee2_b1, ee3_b1))
    ee_w2 = stack_w((ee1_w2, ee2_w2, ee3_w2))
    ee_b2 = stack_b((ee1_b2, ee2_b2, ee3_b2))
    gc_w = stack_w((gc1_w, gc2_w, gc3_w))
    gc_b = stack_b((gc1_b, gc2_b, gc3_b))

    grid = (3, e_p // EDGE_TILE)   # (layer [sequential], edge tile [reduction, last])

    def full(shape):
        return pl.BlockSpec(shape, lambda l, t: (0,) * len(shape))

    def per_layer(shape):
        return pl.BlockSpec(shape, lambda l, t: (l,) + (0,) * (len(shape) - 1))

    grid_spec = pltpu.PrefetchScalarGridSpec(
        num_scalar_prefetch=0,
        grid=grid,
        in_specs=[
            pl.BlockSpec(memory_space=pl.ANY),                     # x: raw HBM, DMA'd once
            pl.BlockSpec((EDGE_TILE, d), lambda l, t: (t, 0)),     # edge features
            pl.BlockSpec((2, EDGE_TILE), lambda l, t: (0, t)),     # [src; tgt] indices
            full((1, n_p)),                                        # batch assignment
            per_layer((1, d, d)),                                  # ee_w1 (stacked)
            per_layer((1, 1, d)),                                  # ee_b1
            per_layer((1, d, d)),                                  # ee_w2
            per_layer((1, 1, d)),                                  # ee_b2
            per_layer((1, d, d)),                                  # gc_w
            per_layer((1, 1, d)),                                  # gc_b
        ],
        out_specs=pl.BlockSpec((b_p, d), lambda l, t: (0, 0)),
        scratch_shapes=[
            pltpu.VMEM((n_p, d), jnp.bfloat16),   # h: node activations (layer input)
            pltpu.VMEM((n_p, d), jnp.bfloat16),   # support = h @ W (MXU operand)
            pltpu.VMEM((n_p, d), jnp.float32),    # scatter-add accumulator
        ],
    )

    out = pl.pallas_call(
        _edgegcn3_sum_kernel,
        out_shape=jax.ShapeDtypeStruct((b_p, d), jnp.float32),
        grid_spec=grid_spec,
        compiler_params=pltpu.CompilerParams(
            # Layer axis is strictly sequential and the edge axis reduces into the
            # node accumulator -> both "arbitrary".
            # TODO(synk): v7x dual-TC split of the edge axis (per-core acc + cross-core
            # reduce) would need core_map + shared-memory reduction; not done here.
            dimension_semantics=("arbitrary", "arbitrary"),
            vmem_limit_bytes=_vmem_limit_bytes(),
        ),
    )(x_p, ef_p, idx_p, bat_p, ee_w1, ee_b1, ee_w2, ee_b2, gc_w, gc_b)

    return out[:num_graphs, :out_features]


# ------------------------- parameter initialization -------------------------

def _linear_init(key, fan_in, fan_out):
    """PyTorch-style uniform(-1/sqrt(fan_in), 1/sqrt(fan_in))."""
    kw, kb = jax.random.split(key)
    bound = 1.0 / jnp.sqrt(jnp.asarray(fan_in, jnp.float32))
    w = jax.random.uniform(kw, (fan_in, fan_out), jnp.float32, -bound, bound)
    b = jax.random.uniform(kb, (1, fan_out), jnp.float32, -bound, bound)
    return w, b


def init_params(key, node_features, edge_features, hidden_features, out_features):
    keys = jax.random.split(key, 9)
    ee1_w1, ee1_b1 = _linear_init(keys[0], edge_features, hidden_features)
    ee1_w2, ee1_b2 = _linear_init(keys[1], hidden_features, hidden_features)
    ee2_w1, ee2_b1 = _linear_init(keys[2], edge_features, hidden_features)
    ee2_w2, ee2_b2 = _linear_init(keys[3], hidden_features, hidden_features)
    ee3_w1, ee3_b1 = _linear_init(keys[4], edge_features, out_features)
    ee3_w2, ee3_b2 = _linear_init(keys[5], out_features, out_features)
    gc1_w, gc1_b = _linear_init(keys[6], node_features, hidden_features)
    gc2_w, gc2_b = _linear_init(keys[7], hidden_features, hidden_features)
    gc3_w, gc3_b = _linear_init(keys[8], hidden_features, out_features)
    return (ee1_w1, ee1_b1, ee1_w2, ee1_b2,
            ee2_w1, ee2_b1, ee2_w2, ee2_b2,
            ee3_w1, ee3_b1, ee3_w2, ee3_b2,
            gc1_w, gc1_b, gc2_w, gc2_b, gc3_w, gc3_b)


# ---------------------------- pure-JAX reference -----------------------------

def reference_forward(params, x, e, esrc, etgt, batch, num_graphs):
    (ee1_w1, ee1_b1, ee1_w2, ee1_b2,
     ee2_w1, ee2_b1, ee2_w2, ee2_b2,
     ee3_w1, ee3_b1, ee3_w2, ee3_b2,
     gc1_w, gc1_b, gc2_w, gc2_b, gc3_w, gc3_b) = params

    def ee(w1, b1, w2, b2):
        h = jax.nn.relu(e @ w1 + b1)
        return jax.nn.sigmoid(h @ w2 + b2)

    def gc(xin, w, b, ef):
        support = xin @ w
        gated = support[esrc] * ef
        agg = jnp.zeros((xin.shape[0], w.shape[1]), jnp.float32).at[etgt].add(gated)
        return agg + b

    h = jax.nn.relu(gc(x, gc1_w, gc1_b, ee(ee1_w1, ee1_b1, ee1_w2, ee1_b2)))
    h = jax.nn.relu(gc(h, gc2_w, gc2_b, ee(ee2_w1, ee2_b1, ee2_w2, ee2_b2)))
    h = gc(h, gc3_w, gc3_b, ee(ee3_w1, ee3_b1, ee3_w2, ee3_b2))
    return jnp.zeros((num_graphs, h.shape[1]), jnp.float32).at[batch].add(h)


# ----------------------------------- main ------------------------------------

if __name__ == "__main__":
    N_NODES = 16
    N_EDGES = 24
    NODE_FEATURES = 8
    EDGE_FEATURES = 6
    HIDDEN_FEATURES = 32
    OUT_FEATURES = 8
    BATCH_SIZE = 2

    key = jax.random.PRNGKey(0)
    k_x, k_e, k_src, k_tgt, k_p = jax.random.split(key, 5)

    node_feat = jax.random.normal(k_x, (N_NODES, NODE_FEATURES), jnp.float32)
    edge_feat = jax.random.normal(k_e, (N_EDGES, EDGE_FEATURES), jnp.float32)
    esrc = jax.random.randint(k_src, (N_EDGES,), 0, N_NODES, jnp.int32)
    etgt = jax.random.randint(k_tgt, (N_EDGES,), 0, N_NODES, jnp.int32)
    batch = jnp.concatenate([jnp.zeros(N_NODES // 2, jnp.int32),
                             jnp.ones(N_NODES - N_NODES // 2, jnp.int32)])

    params = init_params(k_p, NODE_FEATURES, EDGE_FEATURES,
                         HIDDEN_FEATURES, OUT_FEATURES)

    out = edgegcn3_sum_forward(params, node_feat, edge_feat, esrc, etgt,
                               batch, BATCH_SIZE)
    out = jax.block_until_ready(out)

    ref = reference_forward(params, node_feat, edge_feat, esrc, etgt,
                            batch, BATCH_SIZE)
    assert out.shape == (BATCH_SIZE, OUT_FEATURES)
    # bf16 MXU operands with f32 accumulation -> looser tolerance than pure f32.
    assert jnp.allclose(out, ref, atol=5e-2, rtol=5e-2), "kernel mismatch vs reference"

    print("KERNEL_OK")
</pallas_src>

<mosaic_0001>
module attributes {stable_mosaic.version = 11 : i64} {
  func.func @_edgegcn3_sum_kernel(%arg0: i32, %arg1: i32, %arg2: memref<128x128xbf16, #tpu.memory_space<any>>, %arg3: memref<256x128xbf16, #tpu.memory_space<vmem>>, %arg4: memref<2x256xi32, #tpu.memory_space<vmem>>, %arg5: memref<1x128xi32, #tpu.memory_space<vmem>>, %arg6: memref<1x128x128xbf16, #tpu.memory_space<vmem>>, %arg7: memref<1x1x128xf32, #tpu.memory_space<vmem>>, %arg8: memref<1x128x128xbf16, #tpu.memory_space<vmem>>, %arg9: memref<1x1x128xf32, #tpu.memory_space<vmem>>, %arg10: memref<1x128x128xbf16, #tpu.memory_space<vmem>>, %arg11: memref<1x1x128xf32, #tpu.memory_space<vmem>>, %arg12: memref<8x128xf32, #tpu.memory_space<vmem>>, %arg13: memref<128x128xbf16, #tpu.memory_space<vmem>>, %arg14: memref<128x128xbf16, #tpu.memory_space<vmem>>, %arg15: memref<128x128xf32, #tpu.memory_space<vmem>>) attributes {dimension_semantics = [#tpu.dimension_semantics<arbitrary>, #tpu.dimension_semantics<arbitrary>], iteration_bounds = array<i64: 3, 1>, scalar_prefetch = 0 : i64, scratch_operands = 3 : i64, tpu.core_type = #tpu.core_type<tc>, window_params = [{}, {transform_indices = @transform_1, window_bounds = array<i64: 256, 128>}, {transform_indices = @transform_2, window_bounds = array<i64: 2, 256>}, {pipeline_mode = #tpu.pipeline_mode<synchronous>, transform_indices = @transform_3, window_bounds = array<i64: 1, 128>}, {transform_indices = @transform_4, window_bounds = array<i64: 1, 128, 128>}, {transform_indices = @transform_5, window_bounds = array<i64: 1, 1, 128>}, {transform_indices = @transform_6, window_bounds = array<i64: 1, 128, 128>}, {transform_indices = @transform_7, window_bounds = array<i64: 1, 1, 128>}, {transform_indices = @transform_8, window_bounds = array<i64: 1, 128, 128>}, {transform_indices = @transform_9, window_bounds = array<i64: 1, 1, 128>}, {pipeline_mode = #tpu.pipeline_mode<synchronous>, transform_indices = @transform_10, window_bounds = array<i64: 8, 128>}]} {
    %c0_i32 = arith.constant 0 : i32
    %0 = arith.cmpi eq, %arg1, %c0_i32 : i32
    %1 = arith.extui %0 : i1 to i32
    %c0_i32_0 = arith.constant 0 : i32
    %2 = arith.cmpi ne, %1, %c0_i32_0 : i32
    scf.if %2 {
      %c0_i32_30 = arith.constant 0 : i32
      %50 = arith.cmpi eq, %arg0, %c0_i32_30 : i32
      %51 = arith.extui %50 : i1 to i32
      %c0_i32_31 = arith.constant 0 : i32
      %52 = arith.cmpi ne, %51, %c0_i32_31 : i32
      scf.if %52 {
        "tpu.region"() ({
          %61 = tpu.sem_alloc : memref<!tpu.dma_semaphore, #tpu.memory_space<semaphore_mem>>
          tpu.enqueue_dma source(%arg2 : memref<128x128xbf16, #tpu.memory_space<any>>) target(%arg13 : memref<128x128xbf16, #tpu.memory_space<vmem>>) target_semaphore(%61 : memref<!tpu.dma_semaphore, #tpu.memory_space<semaphore_mem>>)
          tpu.wait_dma2 semaphore(%61 : memref<!tpu.dma_semaphore, #tpu.memory_space<semaphore_mem>>) src(%arg2 : memref<128x128xbf16, #tpu.memory_space<any>>) dst(%arg13 : memref<128x128xbf16, #tpu.memory_space<vmem>>)
          tpu.yield
        }) : () -> ()
      } else {
      }
      %c0_32 = arith.constant 0 : index
      %c0_33 = arith.constant 0 : index
      %53 = vector.load %arg13[%c0_32, %c0_33] : memref<128x128xbf16, #tpu.memory_space<vmem>>, vector<128x128xbf16>
      %c0_34 = arith.constant 0 : index
      %c0_35 = arith.constant 0 : index
      %c0_36 = arith.constant 0 : index
      %54 = vector.load %arg10[%c0_34, %c0_35, %c0_36] : memref<1x128x128xbf16, #tpu.memory_space<vmem>>, vector<1x128x128xbf16>
      %55 = vector.shape_cast %54 : vector<1x128x128xbf16> to vector<128x128xbf16>
      %cst_37 = arith.constant dense<0.000000e+00> : vector<128x128xf32>
      %56 = tpu.matmul %53, %55, %cst_37 {dimension_numbers = #tpu.dot_dimension_numbers<[1], [0], [0], [1], [0, 0, 1, 1], [], []>} : vector<128x128xbf16>, vector<128x128xbf16>, vector<128x128xf32> -> vector<128x128xf32>
      %57 = arith.truncf %56 : vector<128x128xf32> to vector<128x128xbf16>
      %c0_38 = arith.constant 0 : index
      %c0_39 = arith.constant 0 : index
      %58 = vector.load %arg14[%c0_38, %c0_39] : memref<128x128xbf16, #tpu.memory_space<vmem>>, vector<128x128xbf16>
      tpu.vector_store %arg14[%c0_38, %c0_39], %57 {strides = array<i32>} : memref<128x128xbf16, #tpu.memory_space<vmem>>, vector<128x128xbf16>,
      %cst_40 = arith.constant 0.000000e+00 : f32
      %59 = vector.broadcast %cst_40 : f32 to vector<128x128xf32>
      %c0_41 = arith.constant 0 : index
      %c0_42 = arith.constant 0 : index
      %60 = vector.load %arg15[%c0_41, %c0_42] : memref<128x128xf32, #tpu.memory_space<vmem>>, vector<128x128xf32>
      tpu.vector_store %arg15[%c0_41, %c0_42], %59 {strides = array<i32>} : memref<128x128xf32, #tpu.memory_space<vmem>>, vector<128x128xf32>,
    } else {
    }
    %c0 = arith.constant 0 : index
    %c0_1 = arith.constant 0 : index
    %3 = vector.load %arg3[%c0, %c0_1] : memref<256x128xbf16, #tpu.memory_space<vmem>>, vector<256x128xbf16>
    %c0_2 = arith.constant 0 : index
    %c0_3 = arith.constant 0 : index
    %c0_4 = arith.constant 0 : index
    %4 = vector.load %arg6[%c0_2, %c0_3, %c0_4] : memref<1x128x128xbf16, #tpu.memory_space<vmem>>, vector<1x128x128xbf16>
    %5 = vector.shape_cast %4 : vector<1x128x128xbf16> to vector<128x128xbf16>
    %cst = arith.constant dense<0.000000e+00> : vector<256x128xf32>
    %6 = tpu.matmul %3, %5, %cst {dimension_numbers = #tpu.dot_dimension_numbers<[1], [0], [0], [1], [0, 0, 1, 1], [], []>} : vector<256x128xbf16>, vector<128x128xbf16>, vector<256x128xf32> -> vector<256x128xf32>
    %c0_5 = arith.constant 0 : index
    %c0_6 = arith.constant 0 : index
    %c0_7 = arith.constant 0 : index
    %7 = vector.load %arg7[%c0_5, %c0_6, %c0_7] : memref<1x1x128xf32, #tpu.memory_space<vmem>>, vector<1x1x128xf32>
    %8 = vector.shape_cast %7 : vector<1x1x128xf32> to vector<1x128xf32>
    %9 = vector.broadcast %8 : vector<1x128xf32> to vector<256x128xf32>
    %10 = arith.addf %6, %9 : vector<256x128xf32>
    %cst_8 = arith.constant 0.000000e+00 : f32
    %11 = vector.broadcast %cst_8 : f32 to vector<256x128xf32>
    %12 = arith.maximumf %10, %11 : vector<256x128xf32>
    %13 = arith.truncf %12 : vector<256x128xf32> to vector<256x128xbf16>
    %c0_9 = arith.constant 0 : index
    %c0_10 = arith.constant 0 : index
    %c0_11 = arith.constant 0 : index
    %14 = vector.load %arg8[%c0_9, %c0_10, %c0_11] : memref<1x128x128xbf16, #tpu.memory_space<vmem>>, vector<1x128x128xbf16>
    %15 = vector.shape_cast %14 : vector<1x128x128xbf16> to vector<128x128xbf16>
    %cst_12 = arith.constant dense<0.000000e+00> : vector<256x128xf32>
    %16 = tpu.matmul %13, %15, %cst_12 {dimension_numbers = #tpu.dot_dimension_numbers<[1], [0], [0], [1], [0, 0, 1, 1], [], []>} : vector<256x128xbf16>, vector<128x128xbf16>, vector<256x128xf32> -> vector<256x128xf32>
    %c0_13 = arith.constant 0 : index
    %c0_14 = arith.constant 0 : index
    %c0_15 = arith.constant 0 : index
    %17 = vector.load %arg9[%c0_13, %c0_14, %c0_15] : memref<1x1x128xf32, #tpu.memory_space<vmem>>, vector<1x1x128xf32>
    %18 = vector.shape_cast %17 : vector<1x1x128xf32> to vector<1x128xf32>
    %19 = vector.broadcast %18 : vector<1x128xf32> to vector<256x128xf32>
    %20 = arith.addf %16, %19 : vector<256x128xf32>
    %21 = arith.negf %20 : vector<256x128xf32>
    %22 = math.exp %21 : vector<256x128xf32>
    %cst_16 = arith.constant 1.000000e+00 : f32
    %23 = vector.broadcast %cst_16 : f32 to vector<256x128xf32>
    %24 = arith.addf %23, %22 : vector<256x128xf32>
    %25 = arith.divf %23, %24 : vector<256x128xf32>
    %c0_17 = arith.constant 0 : index
    %c0_18 = arith.constant 0 : index
    %26 = vector.load %arg4[%c0_17, %c0_18] : memref<2x256xi32, #tpu.memory_space<vmem>>, vector<1x256xi32>
    %c1 = arith.constant 1 : index
    %c0_19 = arith.constant 0 : index
    %27 = vector.load %arg4[%c1, %c0_19] : memref<2x256xi32, #tpu.memory_space<vmem>>, vector<1x256xi32>
    %28 = tpu.iota {dimensions = array<i32: 0>} : vector<128x256xi32>
    %29 = vector.broadcast %26 : vector<1x256xi32> to vector<128x256xi32>
    %30 = arith.cmpi eq, %28, %29 : vector<128x256xi32>
    %31 = arith.extui %30 : vector<128x256xi1> to vector<128x256xi32>
    %32 = arith.sitofp %31 : vector<128x256xi32> to vector<128x256xf32>
    %33 = arith.truncf %32 : vector<128x256xf32> to vector<128x256xbf16>
    %34 = vector.broadcast %27 : vector<1x256xi32> to vector<128x256xi32>
    %35 = arith.cmpi eq, %28, %34 : vector<128x256xi32>
    %36 = arith.extui %35 : vector<128x256xi1> to vector<128x256xi32>
    %37 = arith.sitofp %36 : vector<128x256xi32> to vector<128x256xf32>
    %38 = arith.truncf %37 : vector<128x256xf32> to vector<128x256xbf16>
    %c0_20 = arith.constant 0 : index
    %c0_21 = arith.constant 0 : index
    %39 = vector.load %arg14[%c0_20, %c0_21] : memref<128x128xbf16, #tpu.memory_space<vmem>>, vector<128x128xbf16>
    %cst_22 = arith.constant dense<0.000000e+00> : vector<256x128xf32>
    %40 = tpu.matmul %33, %39, %cst_22 {dimension_numbers = #tpu.dot_dimension_numbers<[0], [0], [1], [1], [0, 1, 1, 1], [], []>} : vector<128x256xbf16>, vector<128x128xbf16>, vector<256x128xf32> -> vector<256x128xf32>
    %41 = arith.mulf %40, %25 : vector<256x128xf32>
    %42 = arith.truncf %41 : vector<256x128xf32> to vector<256x128xbf16>
    %c0_23 = arith.constant 0 : index
    %c0_24 = arith.constant 0 : index
    %43 = vector.load %arg15[%c0_23, %c0_24] : memref<128x128xf32, #tpu.memory_space<vmem>>, vector<128x128xf32>
    %cst_25 = arith.constant dense<0.000000e+00> : vector<128x128xf32>
    %44 = tpu.matmul %38, %42, %cst_25 {dimension_numbers = #tpu.dot_dimension_numbers<[1], [0], [0], [1], [0, 0, 1, 1], [], []>} : vector<128x256xbf16>, vector<256x128xbf16>, vector<128x128xf32> -> vector<128x128xf32>
    %45 = arith.addf %43, %44 : vector<128x128xf32>
    %c0_26 = arith.constant 0 : index
    %c0_27 = arith.constant 0 : index
    %46 = vector.load %arg15[%c0_26, %c0_27] : memref<128x128xf32, #tpu.memory_space<vmem>>, vector<128x128xf32>
    tpu.vector_store %arg15[%c0_26, %c0_27], %45 {strides = array<i32>} : memref<128x128xf32, #tpu.memory_space<vmem>>, vector<128x128xf32>,
    %c0_i32_28 = arith.constant 0 : i32
    %47 = arith.cmpi eq, %arg1, %c0_i32_28 : i32
    %48 = arith.extui %47 : i1 to i32
    %c0_i32_29 = arith.constant 0 : i32
    %49 = arith.cmpi ne, %48, %c0_i32_29 : i32
    scf.if %49 {
      %c0_30 = arith.constant 0 : index
      %c0_31 = arith.constant 0 : index
      %50 = vector.load %arg15[%c0_30, %c0_31] : memref<128x128xf32, #tpu.memory_space<vmem>>, vector<128x128xf32>
      %c0_32 = arith.constant 0 : index
      %c0_33 = arith.constant 0 : index
      %c0_34 = arith.constant 0 : index
      %51 = vector.load %arg11[%c0_32, %c0_33, %c0_34] : memref<1x1x128xf32, #tpu.memory_space<vmem>>, vector<1x1x128xf32>
      %52 = vector.shape_cast %51 : vector<1x1x128xf32> to vector<1x128xf32>
      %53 = vector.broadcast %52 : vector<1x128xf32> to vector<128x128xf32>
      %54 = arith.addf %50, %53 : vector<128x128xf32>
      %c2_i32 = arith.constant 2 : i32
      %55 = arith.cmpi slt, %arg0, %c2_i32 : i32
      %56 = arith.extui %55 : i1 to i32
      %c0_i32_35 = arith.constant 0 : i32
      %57 = arith.cmpi ne, %56, %c0_i32_35 : i32
      scf.if %57 {
        %cst_38 = arith.constant 0.000000e+00 : f32
        %61 = vector.broadcast %cst_38 : f32 to vector<128x128xf32>
        %62 = arith.maximumf %54, %61 : vector<128x128xf32>
        %63 = arith.truncf %62 : vector<128x128xf32> to vector<128x128xbf16>
        %c0_39 = arith.constant 0 : index
        %c0_40 = arith.constant 0 : index
        %64 = vector.load %arg13[%c0_39, %c0_40] : memref<128x128xbf16, #tpu.memory_space<vmem>>, vector<128x128xbf16>
        tpu.vector_store %arg13[%c0_39, %c0_40], %63 {strides = array<i32>} : memref<128x128xbf16, #tpu.memory_space<vmem>>, vector<128x128xbf16>,
      } else {
      }
      %c2_i32_36 = arith.constant 2 : i32
      %58 = arith.cmpi eq, %arg0, %c2_i32_36 : i32
      %59 = arith.extui %58 : i1 to i32
      %c0_i32_37 = arith.constant 0 : i32
      %60 = arith.cmpi ne, %59, %c0_i32_37 : i32
      scf.if %60 {
        %c0_38 = arith.constant 0 : index
        %c0_39 = arith.constant 0 : index
        %61 = vector.load %arg5[%c0_38, %c0_39] : memref<1x128xi32, #tpu.memory_space<vmem>>, vector<1x128xi32>
        %62 = tpu.iota {dimensions = array<i32: 0>} : vector<8x128xi32>
        %63 = vector.broadcast %61 : vector<1x128xi32> to vector<8x128xi32>
        %64 = arith.cmpi eq, %62, %63 : vector<8x128xi32>
        %65 = arith.extui %64 : vector<8x128xi1> to vector<8x128xi32>
        %66 = arith.sitofp %65 : vector<8x128xi32> to vector<8x128xf32>
        %67 = arith.truncf %66 : vector<8x128xf32> to vector<8x128xbf16>
        %68 = arith.truncf %54 : vector<128x128xf32> to vector<128x128xbf16>
        %cst_40 = arith.constant dense<0.000000e+00> : vector<8x128xf32>
        %69 = tpu.matmul %67, %68, %cst_40 {dimension_numbers = #tpu.dot_dimension_numbers<[1], [0], [0], [1], [0, 0, 1, 1], [], []>} : vector<8x128xbf16>, vector<128x128xbf16>, vector<8x128xf32> -> vector<8x128xf32>
        %c0_41 = arith.constant 0 : index
        %c0_42 = arith.constant 0 : index
        %70 = vector.load %arg12[%c0_41, %c0_42] : memref<8x128xf32, #tpu.memory_space<vmem>>, vector<8x128xf32>
        tpu.vector_store %arg12[%c0_41, %c0_42], %69 {strides = array<i32>} : memref<8x128xf32, #tpu.memory_space<vmem>>, vector<8x128xf32>,
      } else {
      }
    } else {
    }
    return
  }
  func.func @transform_1(%arg0: i32, %arg1: i32) -> (i32, i32) {
    %c0_i32 = arith.constant 0 : i32
    %c0_i32_0 = arith.constant 0 : i32
    return %arg1, %c0_i32 : i32, i32
  }
  func.func @transform_2(%arg0: i32, %arg1: i32) -> (i32, i32) {
    %c0_i32 = arith.constant 0 : i32
    %c0_i32_0 = arith.constant 0 : i32
    return %c0_i32, %arg1 : i32, i32
  }
  func.func @transform_3(%arg0: i32, %arg1: i32) -> (i32, i32) {
    %c0_i32 = arith.constant 0 : i32
    %c0_i32_0 = arith.constant 0 : i32
    %c0_i32_1 = arith.constant 0 : i32
    return %c0_i32, %c0_i32_0 : i32, i32
  }
  func.func @transform_4(%arg0: i32, %arg1: i32) -> (i32, i32, i32) {
    %c0_i32 = arith.constant 0 : i32
    %c0_i32_0 = arith.constant 0 : i32
    %c0_i32_1 = arith.constant 0 : i32
    return %arg0, %c0_i32, %c0_i32_0 : i32, i32, i32
  }
  func.func @transform_5(%arg0: i32, %arg1: i32) -> (i32, i32, i32) {
    %c0_i32 = arith.constant 0 : i32
    %c0_i32_0 = arith.constant 0 : i32
    %c0_i32_1 = arith.constant 0 : i32
    return %arg0, %c0_i32, %c0_i32_0 : i32, i32, i32
  }
  func.func @transform_6(%arg0: i32, %arg1: i32) -> (i32, i32, i32) {
    %c0_i32 = arith.constant 0 : i32
    %c0_i32_0 = arith.constant 0 : i32
    %c0_i32_1 = arith.constant 0 : i32
    return %arg0, %c0_i32, %c0_i32_0 : i32, i32, i32
  }
  func.func @transform_7(%arg0: i32, %arg1: i32) -> (i32, i32, i32) {
    %c0_i32 = arith.constant 0 : i32
    %c0_i32_0 = arith.constant 0 : i32
    %c0_i32_1 = arith.constant 0 : i32
    return %arg0, %c0_i32, %c0_i32_0 : i32, i32, i32
  }
  func.func @transform_8(%arg0: i32, %arg1: i32) -> (i32, i32, i32) {
    %c0_i32 = arith.constant 0 : i32
    %c0_i32_0 = arith.constant 0 : i32
    %c0_i32_1 = arith.constant 0 : i32
    return %arg0, %c0_i32, %c0_i32_0 : i32, i32, i32
  }
  func.func @transform_9(%arg0: i32, %arg1: i32) -> (i32, i32, i32) {
    %c0_i32 = arith.constant 0 : i32
    %c0_i32_0 = arith.constant 0 : i32
    %c0_i32_1 = arith.constant 0 : i32
    return %arg0, %c0_i32, %c0_i32_0 : i32, i32, i32
  }
  func.func @transform_10(%arg0: i32, %arg1: i32) -> (i32, i32) {
    %c0_i32 = arith.constant 0 : i32
    %c0_i32_0 = arith.constant 0 : i32
    %c0_i32_1 = arith.constant 0 : i32
    return %c0_i32, %c0_i32_0 : i32, i32
  }
}

</mosaic_0001>

<bundles_post_ra>
// kernel: tpu_custom_call.1
= control target key start
LH: loop header
LB: loop body
LE: loop exit
PB: predicated region body
PF: predicated region fallthrough
CT: control target
= control target key end

     0   :  { %s4448_s0 = inlined_call_operand.hbm [shape: bf16[128,128], index: 0, kind: input, shape index: {}]   ;;  %s4449_s1 = inlined_call_operand.hbm [shape: bf16[256,128], index: 1, kind: input, shape index: {}]   ;;  %s4450_s2 = inlined_call_operand.vmem [shape: s32[2,256], index: 2, kind: input, shape index: {}]   ;;  %s4451_s3 = inlined_call_operand.vmem [shape: s32[1,128], index: 3, kind: input, shape index: {}]   ;;  %s4452_s4 = inlined_call_operand.hbm [shape: bf16[3,128,128], index: 4, kind: input, shape index: {}]   ;;  %s4453_s5 = inlined_call_operand.vmem [shape: f32[3,1,128], index: 5, kind: input, shape index: {}]   ;;  %s4454_s6 = inlined_call_operand.hbm [shape: bf16[3,128,128], index: 6, kind: input, shape index: {}]   ;;  %s4455_s7 = inlined_call_operand.vmem [shape: f32[3,1,128], index: 7, kind: input, shape index: {}]   ;;  %s4456_s8 = inlined_call_operand.hbm [shape: bf16[3,128,128], index: 8, kind: input, shape index: {}]   ;;  %s4457_s9 = inlined_call_operand.vmem [shape: f32[3,1,128], index: 9, kind: input, shape index: {}]   ;;  %s4458_s10 = inlined_call_operand.hbm [shape: f32[8,128], index: 10, kind: output, shape index: {}]  }
   0x1   :  { %4475 = sst [smem:[#allocation28_spill]] %s4451_s3 }
   0x2   :  { %4476 = sst [smem:[#allocation29_spill]] %s4452_s4 }
   0x3   :  { %4477 = sst [smem:[#allocation30_spill]] %s4454_s6 }
   0x4   :  { %4478 = sst [smem:[#allocation31_spill]] %s4458_s10 }
   0x5   :  { %15 = vsyncpa [#allocation6], 0 }
   0x6   :  { %16 = vsyncpa [#allocation9], 0 }
   0x7   :  { %18 = vsyncpa [#allocation9 + $0x1], 0 }
   0x8   :  { %19 = vsyncpa [#allocation12], 0 }
   0x9   :  { %21 = vsyncpa [#allocation12 + $0x1], 0 }
   0xa   :  { %22 = vsyncpa [#allocation7], 0  ;;  %s3670_s13 = smov 0   ;;  %s3672_s14 = smov 0  }
   0xb   :  { %s3674_s15 = smov 0   ;;  %s3676_s16 = smov 0  }
   0xc   :  { %s3678_s17 = smov 0   ;;  %s3680_s18 = smov 0  }
   0xd LB: > { %4479 = sst [smem:[#allocation24_spill]] %s3596_s17  ;;  %s40_s19 = sadd.s32 1, %s3596_s17  ;;  %s3600_s18 = sphi %s3680_s18, %s28_s18   ;;  %s3596_s17 = sphi %s3678_s17, %s4506_s17   ;;  %s3592_s16 = sphi %s3676_s16, %s4505_s16   ;;  %s3588_s15 = sphi %s3674_s15, %s4509_s15   ;;  %s3584_s14 = sphi %s3672_s14, %s4508_s14   ;;  %s3580_s13 = sphi %s3670_s13, %s4507_s13  }
   0xe   : > { %4480 = sst [smem:[#allocation25_spill]] %s3600_s18  ;;  %s120_s20 = sadd.s32 1, %s3588_s15 }
   0xf   : > { %p42_p0 = scmp.ge.s32.totalorder %s40_s19, 3  ;;  %p127_p1 = scmp.ne.s32.totalorder %s3588_s15, %s3584_s14 }
  0x10   : > { %p128_p2 = scmp.eq.s32.totalorder %s3600_s18, 0  ;;  %p3140_p5 = scmp.lt.s32.totalorder %s3600_s18, 3 }
  0x11   : > { %s4511_s19 = smov (%p42_p0, %s40_s19), 0  ;;  %s336_s23 = sand.u32 1, %s3600_s18  }
  0x12   : > { %4481 = sst [smem:[#allocation26_spill]] %s4511_s19  ;;  %p3707_p3 = por %p128_p2, %p127_p1 }
  0x13   : > { %s117_s22 = ssub.s32 %s3596_s17, %s4511_s19  ;;  %s4459_s24 = sand.u32 1, %s3588_s15  }
  0x14   : > { %p118_p4 = scmp.eq.s32.totalorder %s117_s22, 0  ;;  %s3721_s26 = sshll.u32 %s4459_s24, 6 }
  0x15   : > { %s3724_s27 = sshll.u32 %s3596_s17, 10  ;;  %s4484_s4 = sld [smem:[#allocation29_spill]] }
  0x16   : > { %s3717_s25 = scalar_select %p118_p4, %s3588_s15, %s120_s20  }
  0x17   : > { %s340_s11 = scalar_lea.vmem [#allocation8], %s3721_s26  ;;  %p3737_p6 = pnand %p3140_p5, %p3707_p3 }
  0x18   : > { %4483 = sst [smem:[#allocation27_spill]] %s3717_s25  ;;  %s347_s12 = sshll.u32 %s340_s11, 4  ;;  %s3733_s12 = int_to_ptr.vmem [resolvable:$true] %s347_s12 }
  0x19   : > { %s4485_s20 = scalar_select %p3737_p6, 1, 0 }
  0x1a   : > { %s3741_s22 = scalar_lea.sflag [#allocation9], %s336_s23  ;;  %p3747_p8 = pneg %p3737_p6 }
  0x1b   : > { %s3730_s30 = scalar_lea.hbm %s4484_s4, %s3724_s27  ;;  %s3375_s11 = scalar_lea.hbm %s4484_s4, 3072 }
  0x1c   : > { %s3370_s24 = scalar_lea.hbm %s3730_s30, 1024  ;;  %p3376_p11 = scmp.lt.u32.totalorder %s3730_s30, %s4484_s4 }
  0x1d   : > { %p3371_p7 = scmp.ne.s32.totalorder %s3730_s30, %s3370_s24  ;;  %p3377_p12 = scmp.lt.u32.totalorder %s3375_s11, %s3370_s24 }
  0x1e   : > { %s4486_s28 = scalar_select %p3747_p8, 1, 0 }
  0x1f   : > { %p3373_p9 = pnand %p3747_p8, %p3371_p7  ;;  %p3378_p13 = por %p3377_p12, %p3376_p11 }
  0x20   : > { %p3379_p0 = scmp.lt.u32.totalorder %s3370_s24, %s3730_s30 }
  0x21   : > { %p3374_p10 = pneg %p3373_p9 }
  0x22   : > { %p3380_p1 = por %p3379_p0, %p3378_p13 }
  0x24   : > { %p3381_p2 = pnand %p3380_p1, %p3374_p10 }
  0x26   : > { %3384 = shalt.err (!%p3381_p2)
}
  0x27   : > { %s3385_s23 = scalar_lea.vmem %s3733_s12, 1024  ;;  %s3602_s29 = smov [#allocation8]  }
  0x28   : > { %p3386_p3 = scmp.ne.s32.totalorder %s3733_s12, %s3385_s23  ;;  %s3390_s21 = sshll.u32 %s3602_s29, 4  ;;  %s3391_s21 = int_to_ptr.vmem [resolvable:$false] %s3390_s21 }
  0x29   : > { %s3392_s17 = scalar_lea.vmem %s3391_s21, 2048  ;;  %p3393_p7 = scmp.lt.s32.totalorder %s3733_s12, %s3391_s21 }
  0x2a   : > { %p3388_p4 = pnand %p3386_p3, %p3747_p8  ;;  %p3394_p9 = scmp.lt.s32.totalorder %s3392_s17, %s3385_s23 }
  0x2c   : > { %p3389_p5 = pneg %p3388_p4  ;;  %p3395_p11 = por %p3394_p9, %p3393_p7 }
  0x2e   : > { %p3396_p12 = pnand %p3395_p11, %p3389_p5 }
  0x30   : > { %3399 = shalt.err (!%p3396_p12)
}
  0x31   : > { %s4462_s19 = smov 64   ;;  %s4464_s24 = smov 4  }
  0x32   : > { %3132 = dma.hbm_to_vmem [thread:$0]  (!%p3737_p6), %s3730_s30, 1024, %s3733_s12, %s3741_s22, %s4462_s19, %s4462_s19, %s4464_s24  }
  0x33   : > { %s3775_s11 = sadd.s32 4294967295, %s3600_s18   ;;  %p133_p10 = scmp.ne.s32.totalorder %s3584_s14, %s3580_s13 }
  0x34   : > { %p4468_p13 = scmp.eq.s32.totalorder %s3775_s11, 0  ;;  %p2534_p0 = scmp.ge.s32.totalorder %s3600_s18, 1 }
  0x35   : > { %p295_p1 = scmp.lt.s32.totalorder %s3600_s18, 4  ;;  %s3605_s30 = smov [#allocation5]  }
  0x36   : > { %p3784_p2 = por %p4468_p13, %p133_p10  ;;  %s310_s12 = sshll.u32 %s3605_s30, 4  ;;  %s3794_s12 = int_to_ptr.vmem [resolvable:$true] %s310_s12 }
  0x37   : > { %p3788_p3 = pnand %p2534_p0, %p295_p1  ;;  %s4489_s6 = sld [smem:[#allocation30_spill]] }
  0x38   : > { %s4487_s23 = scalar_select %p3784_p2, 1, 0 }
  0x39   : > { %s4488_s29 = scalar_select %p3788_p3, 1, 0 }
  0x3a   : > { %p3125_p4 = pneg %p3788_p3  ;;  %s367_s19 = scalar_lea.vmem [#allocation10], %s3721_s26 }
  0x3b   : > { %s374_s24 = sshll.u32 %s367_s19, 4  ;;  %s3809_s24 = int_to_ptr.vmem [resolvable:$true] %s374_s24 }
  0x3c   : > { %p3805_p5 = pnand %p3125_p4, %p4468_p13 }
  0x3d   : > { %s3800_s17 = scalar_lea.hbm %s4489_s6, %s3724_s27  ;;  %s3405_s25 = scalar_lea.hbm %s4489_s6, 3072 }
  0x3e   : > { %s4490_s4 = scalar_select %p3805_p5, 1, 0 }
  0x3f   : > { %s3400_s30 = scalar_lea.hbm %s3800_s17, 1024  ;;  %p3406_p12 = scmp.lt.u32.totalorder %s3800_s17, %s4489_s6 }
  0x40   : > { %p3401_p7 = scmp.ne.s32.totalorder %s3800_s17, %s3400_s30  ;;  %p3407_p10 = scmp.lt.u32.totalorder %s3405_s25, %s3400_s30 }
  0x41   : > { %p3409_p1 = scmp.lt.u32.totalorder %s3400_s30, %s3800_s17 }
  0x42   : > { %p3403_p9 = pnand %p3401_p7, %p3747_p8  ;;  %p3408_p0 = por %p3407_p10, %p3406_p12 }
  0x44   : > { %p3404_p11 = pneg %p3403_p9  ;;  %p3410_p4 = por %p3409_p1, %p3408_p0 }
  0x46   : > { %p3411_p13 = pnand %p3410_p4, %p3404_p11 }
  0x48   : > { %3414 = shalt.err (!%p3411_p13)
}
  0x49   : > { %s3415_s19 = scalar_lea.vmem %s3809_s24, 1024  ;;  %s3606_s13 = smov [#allocation10]  }
  0x4a   : > { %p3416_p7 = scmp.ne.s32.totalorder %s3809_s24, %s3415_s19  ;;  %s3420_s21 = sshll.u32 %s3606_s13, 4  ;;  %s3421_s21 = int_to_ptr.vmem [resolvable:$false] %s3420_s21 }
  0x4b   : > { %s3422_s10 = scalar_lea.vmem %s3421_s21, 2048  ;;  %p3423_p3 = scmp.lt.s32.totalorder %s3809_s24, %s3421_s21 }
  0x4c   : > { %p3418_p9 = pnand %p3416_p7, %p3747_p8  ;;  %p3424_p5 = scmp.lt.s32.totalorder %s3422_s10, %s3415_s19 }
  0x4e   : > { %p3419_p2 = pneg %p3418_p9  ;;  %p3425_p12 = por %p3424_p5, %p3423_p3 }
  0x50   : > { %p3426_p10 = pnand %p3425_p12, %p3419_p2 }
  0x52   : > { %3429 = shalt.err (!%p3426_p10)
}
  0x53   : > { %s4491_s18 = smov 4   ;;  %s4492_s25 = smov 64  }
  0x54   : > { %3135 = dma.hbm_to_vmem [thread:$0]  (!%p3737_p6), %s3800_s17, 1024, %s3809_s24, %s3741_s22, %s4492_s25, %s4492_s25, %s4491_s18  }
  0x55   : > { %s3430_s13 = scalar_lea.hbm %s4449_s1, 2048  ;;  %p4493_p2 = scmp.ne.s32.totalorder %s4490_s4, 0 }
  0x56   : > { %p3431_p13 = scmp.ne.s32.totalorder %s4449_s1, %s3430_s13  ;;  %p3437_p0 = scmp.lt.u32.totalorder %s3430_s13, %s4449_s1 }
  0x57   : > { %p3432_p3 = pneg %p4493_p2 }
  0x59   : > { %p3433_p5 = pnand %p3432_p3, %p3431_p13 }
  0x5b   : > { %p3434_p11 = pneg %p3433_p5 }
  0x5d   : > { %p3439_p1 = pnand %p3437_p0, %p3434_p11 }
  0x5f   : > { %3442 = shalt.err (!%p3439_p1)
}
  0x60   : > { %s3443_s22 = scalar_lea.vmem %s3794_s12, 2048  ;;  %p3451_p12 = scmp.lt.s32.totalorder %s3794_s12, %s3794_s12 }
  0x61   : > { %p3444_p4 = scmp.ne.s32.totalorder %s3794_s12, %s3443_s22  ;;  %p3452_p10 = scmp.lt.s32.totalorder %s3443_s22, %s3443_s22 }
  0x63   : > { %p3446_p7 = pnand %p3444_p4, %p3432_p3  ;;  %p3453_p6 = por %p3452_p10, %p3451_p12 }
  0x65   : > { %p3447_p9 = pneg %p3446_p7 }
  0x67   : > { %p3454_p8 = pnand %p3453_p6, %p3447_p9 }
  0x69   : > { %3457 = shalt.err (!%p3454_p8)
}
  0x6a   : > { %3128 = dma.hbm_to_vmem [thread:$0]  (!%p4493_p2), %s4449_s1, 2048, %s3794_s12, [#allocation6], %s4492_s25, %s4492_s25, %s4491_s18  }
  0x6b   : > { %s3864_s30 = scalar_lea.hbm %s4456_s8, %s3724_s27  ;;  %s394_s4 = scalar_lea.vmem [#allocation11], %s3721_s26 }
  0x6c   : > { %s401_s13 = sshll.u32 %s394_s4, 4  ;;  %s4494_s21 = sand.u32 1, %s3588_s15   ;;  %s3867_s13 = int_to_ptr.vmem [resolvable:$true] %s401_s13 }
  0x6d   : > { %s3871_s19 = scalar_lea.sflag [#allocation12], %s4494_s21  ;;  %s3458_s10 = scalar_lea.hbm %s3864_s30, 1024 }
  0x6e   : > { %p3459_p6 = scmp.ne.s32.totalorder %s3864_s30, %s3458_s10  ;;  %p4495_p8 = scmp.ne.s32.totalorder %s4486_s28, 0 }
  0x6f   : > { %s3463_s27 = scalar_lea.hbm %s4456_s8, 3072  ;;  %p3464_p3 = scmp.lt.u32.totalorder %s3864_s30, %s4456_s8 }
  0x70   : > { %p3461_p13 = pnand %p3459_p6, %p4495_p8  ;;  %p3465_p5 = scmp.lt.u32.totalorder %s3463_s27, %s3458_s10 }
  0x71   : > { %p3467_p0 = scmp.lt.u32.totalorder %s3458_s10, %s3864_s30 }
  0x72   : > { %p3462_p2 = pneg %p3461_p13  ;;  %p3466_p11 = por %p3465_p5, %p3464_p3 }
  0x74   : > { %p3468_p1 = por %p3467_p0, %p3466_p11 }
  0x76   : > { %p3469_p4 = pnand %p3468_p1, %p3462_p2 }
  0x78   : > { %3472 = shalt.err (!%p3469_p4)
}
  0x79   : > { %s3473_s26 = scalar_lea.vmem %s3867_s13, 1024  ;;  %s3607_s24 = smov [#allocation11]  }
  0x7a   : > { %p3474_p7 = scmp.ne.s32.totalorder %s3867_s13, %s3473_s26  ;;  %s3478_s17 = sshll.u32 %s3607_s24, 4  ;;  %s3479_s17 = int_to_ptr.vmem [resolvable:$false] %s3478_s17 }
  0x7b   : > { %s3480_s4 = scalar_lea.vmem %s3479_s17, 2048  ;;  %p3481_p10 = scmp.lt.s32.totalorder %s3867_s13, %s3479_s17 }
  0x7c   : > { %p3476_p9 = pnand %p3474_p7, %p4495_p8  ;;  %p3482_p6 = scmp.lt.s32.totalorder %s3480_s4, %s3473_s26 }
  0x7e   : > { %p3477_p12 = pneg %p3476_p9  ;;  %p3483_p13 = por %p3482_p6, %p3481_p10 }
  0x80   : > { %p3484_p3 = pnand %p3483_p13, %p3477_p12 }
  0x82   : > { %3487 = shalt.err (!%p3484_p3)
}
  0x83   : > { %p4496_p2 = scmp.ne.s32.totalorder %s4485_s20, 0  ;;  %p4497_p8 = scmp.ne.s32.totalorder %s4488_s29, 0 }
  0x84   : > { %p4498_p5 = scmp.eq.s32.totalorder (!%p4497_p8), %s3775_s11, 0 }
  0x85   : > { %3138 = dma.hbm_to_vmem [thread:$0]  (!%p4496_p2), %s3864_s30, 1024, %s3867_s13, %s3871_s19, %s4492_s25, %s4492_s25, %s4491_s18  }
  0x86   : > { %419 = sbr.rel (%p4497_p8) target bundleno = 1293 (0x50d), region = 56 }
  0x8d   : > { %3561 = dma.done.wait (%p4498_p5), [#allocation6], 2048   ;;  %p4499_p11 = pmov %p4498_p5 }
  0x8e   : > { %s425_s20 = sand.u32 1, %s3775_s11   ;;  %s427_s28 = sand.u32 1, %s3584_s14  }
  0x8f   : > { %3563 = vsyncadd (%p4499_p11), [#allocation6], 4294965248  ;;  %s2549_s21 = sshll.u32 %s427_s28, 6  ;;  %s426_s10 = scalar_lea.sflag [#allocation9], %s425_s20 }
  0x90   : > { %s3906_s12 = scalar_lea.vmem [#allocation8], %s2549_s21  ;;  %p4500_p0 = scmp.ne.s32.totalorder %s4487_s23, 0 }
  0x92   : > { %3565 = dma.done.wait (%p4500_p0), %s426_s10, 2048  }
  0x93   : > { %3567 = vsyncadd (%p4500_p0), %s426_s10, 4294965248  ;;  %s3912_s29 = scalar_lea.vmem [#allocation10], %s2549_s21  ;;  %s444_s18 = scalar_lea.sflag [#allocation12], %s427_s28 }
  0x94   : > { %s3914_s25 = scalar_lea.vmem [#allocation11], %s2549_s21 }
  0x95   : > { %3569 = dma.done.wait (%p4500_p0), %s444_s18, 1024  }
  0x96   : > { %3571 = vsyncadd (%p4500_p0), %s444_s18, 4294966272  ;;  %p508_p1 = scmp.lt.s32.totalorder %s3592_s16, 2  ;;  %p2552_p4 = scmp.ne.s32.totalorder %s3592_s16, 0 }
  0x98   : > { %s3922_s30 = scalar_select %p508_p1, %s3592_s16, 2 }
  0x99   : > { %525 = sbr.rel (%p2552_p4) target bundleno = 178 (0xb2), region = 80 }
  0x9a   : > { %s510_s22 = scalar_lea.vmem %s4453_s5, %s3922_s30  ;;  %s513_s6 = scalar_lea.vmem %s4455_s7, %s3922_s30 }
  0x9b   : > { %s516_s23 = scalar_lea.vmem %s4457_s9, %s3922_s30 }
  0xa0   : > { %s3608_s17 = smov [#allocation2]   ;;  %s3488_s21 = scalar_lea.hbm %s4448_s0, 1024 }
  0xa1   : > { %s533_s4 = sshll.u32 %s3608_s17, 4  ;;  %p3489_p7 = scmp.ne.s32.totalorder %s4448_s0, %s3488_s21  ;;  %s534_s4 = int_to_ptr.vmem [resolvable:$true] %s533_s4 }
  0xa2   : > { %p3492_p9 = scmp.lt.u32.totalorder %s3488_s21, %s4448_s0 }
  0xa4   : > { %p3494_p12 = pnand %p3492_p9, %p3489_p7 }
  0xa6   : > { %3497 = shalt.err (!%p3494_p12)  }
  0xa7   : > { %s3498_s27 = scalar_lea.vmem %s534_s4, 1024  ;;  %p3503_p6 = scmp.lt.s32.totalorder %s534_s4, %s534_s4 }
  0xa8   : > { %p3499_p10 = scmp.ne.s32.totalorder %s534_s4, %s3498_s27  ;;  %p3504_p13 = scmp.lt.s32.totalorder %s3498_s27, %s3498_s27 }
  0xaa   : > { %p3505_p3 = por %p3504_p13, %p3503_p6 }
  0xac   : > { %p3506_p2 = pnand %p3505_p3, %p3499_p10 }
  0xae   : > { %3509 = shalt.err (!%p3506_p2)  }
  0xaf   : > { %536 = dma.hbm_to_vmem [thread:$0]  %s4448_s0, 1024, %s534_s4, [#allocation14] }
  0xb0   : > { %3572 = dma.done.wait [#allocation14], 1024 }
  0xb1   : > { %3573 = vsyncadd [#allocation14], 4294966272 }
  0xb2 PF: > { %v3202_v0 = vld [vmem:[%s3914_s25] sm:$0xff]   ;;  %v3204_v2 = vld [vmem:[%s3914_s25 + $0x8] sm:$0xff]   ;;  %v3206_v4 = vld [vmem:[%s3914_s25 + $0x10] sm:$0xff]   ;;  %v1577_v16 = vlaneseq  ;;  %v3609_v37 = vmov 0.0   ;;  %p2725_p8 = scmp.ge.s32.totalorder %s3592_s16, 2 }
  0xb3   : > { %v3203_v1 = vld [vmem:[%s3906_s12] sm:$0xff]   ;;  %2899 = vmatprep.subr.bf16.mxu0 %v3202_v0  ;;  %v3205_v3 = vld [vmem:[%s3906_s12 + $0x8] sm:$0xff]   ;;  %v3207_v5 = vld [vmem:[%s3906_s12 + $0x10] sm:$0xff]  }
  0xb4   : > { %2931 = vmatprep.subr.bf16.mxu1 %v3203_v1  ;;  %2900 = vmatpush3.bf16.msra.mxu0 %v3202_v0  ;;  %v3208_v6 = vld [vmem:[%s3914_s25 + $0x18] sm:$0xff]   ;;  %v3210_v8 = vld [vmem:[%s3914_s25 + $0x20] sm:$0xff]   ;;  %v3212_v10 = vld [vmem:[%s3914_s25 + $0x28] sm:$0xff]   ;;  %v3965_v19 = vshrl.u32 %v1577_v16, 7 }
  0xb5   : > { %2932 = vmatpush3.bf16.msra.mxu1 %v3203_v1  ;;  %2901 = vmatprep.subr.bf16.mxu0 %v3204_v2  ;;  %v3209_v7 = vld [vmem:[%s3906_s12 + $0x18] sm:$0xff]   ;;  %v3211_v9 = vld [vmem:[%s3906_s12 + $0x20] sm:$0xff]   ;;  %v3213_v12 = vld [vmem:[%s3906_s12 + $0x28] sm:$0xff]  }
  0xb6   : > { %2933 = vmatprep.subr.bf16.mxu1 %v3205_v3  ;;  %v541_v11 = vld [vmem:[#allocation2] sm:$0xff]  ;;  %v3214_v14 = vld [vmem:[%s3914_s25 + $0x30] sm:$0xff]   ;;  %v3216_v17 = vld [vmem:[%s3914_s25 + $0x38] sm:$0xff]   ;;  %v3968_v22 = vadd.s32 8, %v3965_v19  ;;  %v1596_v24 = vsub.s32 0, %v3965_v19  ;;  %v3972_v26 = vadd.s32 16, %v3965_v19 }
  0xb7   : > { %2915 = vmatprep.mubr.bf16.mxu0 %v541_v11  ;;  %v3218_v13 = vld [vmem:[#allocation5] sm:$0xff]   ;;  %v3215_v15 = vld [vmem:[%s3906_s12 + $0x30] sm:$0xff]   ;;  %v3217_v18 = vld [vmem:[%s3906_s12 + $0x38] sm:$0xff]   ;;  %v3975_v27 = vadd.s32 24, %v3965_v19  ;;  %v3978_v28 = vadd.s32 32, %v3965_v19  ;;  %v3984_v30 = vadd.s32 40, %v3965_v19 }
  0xb8   : > { %2902 = vmatpush3.bf16.msra.mxu0 %v3204_v2  ;;  %2947 = vmatprep.mubr.bf16.mxu1 %v3218_v13  ;;  %v542_v20 = vld [vmem:[#allocation2 + $0x8] sm:$0xff]  ;;  %v543_v23 = vld [vmem:[#allocation2 + $0x10] sm:$0xff]  ;;  %v1574_v29 = vld [vmem:[%s4450_s2] ss:$2 sm:$0x3]  ;;  %v3991_v32 = vadd.s32 48, %v3965_v19 }
  0xb9   : > { %2934 = vmatpush3.bf16.msra.mxu1 %v3205_v3  ;;  %2903 = vmatprep.subr.bf16.mxu0 %v3206_v4  ;;  %v3219_v21 = vld [vmem:[#allocation5 + $0x8] sm:$0xff]   ;;  %v3220_v25 = vld [vmem:[#allocation5 + $0x10] sm:$0xff]   ;;  %v3988_v31 = vrot.slane %v1574_v29, %v1596_v24  ;;  %v3234_v33 = vld [vmem:[%s3912_s29] sm:$0xff]   ;;  %v1600_v34 = vsub.s32 1, %v3965_v19  ;;  %v4013_v44 = vadd.s32 56, %v3965_v19  ;;  %v4016_v48 = vadd.s32 64, %v3965_v19 }
  0xba   : > { %2935 = vmatprep.subr.bf16.mxu1 %v3207_v5  ;;  %v3235_v35 = vld [vmem:[%s3912_s29 + $0x8] sm:$0xff]   ;;  %v544_v36 = vld [vmem:[#allocation2 + $0x18] sm:$0xff]  ;;  %v545_v45 = vld [vmem:[#allocation2 + $0x20] sm:$0xff]  ;;  %v4030_v53 = vadd.s32 72, %v3965_v19  ;;  %v4033_v55 = vadd.s32 80, %v3965_v19  ;;  %v4036_v56 = vadd.s32 88, %v3965_v19 }
  0xbb   : > { %vm1602_vm0 = vcmp.eq.s32.totalorder %v3965_v19, %v3988_v31  ;;  %vm1604_vm1 = vcmp.eq.s32.totalorder %v3968_v22, %v3988_v31  ;;  %vm1606_vm2 = vcmp.eq.s32.totalorder %v3972_v26, %v3988_v31  ;;  %vm1608_vm3 = vcmp.eq.s32.totalorder %v3975_v27, %v3988_v31  ;;  %v3221_v42 = vld [vmem:[#allocation5 + $0x18] sm:$0xff]   ;;  %v3222_v46 = vld [vmem:[#allocation5 + $0x20] sm:$0xff]   ;;  %v3236_v49 = vld [vmem:[%s3912_s29 + $0x10] sm:$0xff]  }
  0xbc   : > { %2904 = vmatpush3.bf16.msra.mxu0 %v3206_v4  ;;  %v2628_v38 = vsel %vm1602_vm0, 1.0, %v3609_v37  ;;  %v2630_v39 = vsel %vm1604_vm1, 1.0, %v3609_v37  ;;  %v2632_v40 = vsel %vm1606_vm2, 1.0, %v3609_v37  ;;  %v2634_v41 = vsel %vm1608_vm3, 1.0, %v3609_v37  ;;  %v3237_v57 = vld [vmem:[%s3912_s29 + $0x18] sm:$0xff]   ;;  %v546_v60 = vld [vmem:[#allocation2 + $0x28] sm:$0xff] }
  0xbd   : > { %2936 = vmatpush3.bf16.msra.mxu1 %v3207_v5  ;;  %2905 = vmatprep.subr.bf16.mxu0 %v3208_v6  ;;  %v1698_v43 = vpack.c.bf16 %v2630_v39, %v2628_v38  ;;  %vm1610_vm4 = vcmp.eq.s32.totalorder %v3978_v28, %v3988_v31  ;;  %vm1612_vm5 = vcmp.eq.s32.totalorder %v3984_v30, %v3988_v31  ;;  %v3223_v61 = vld [vmem:[#allocation5 + $0x28] sm:$0xff]   ;;  %v547_v63 = vld [vmem:[#allocation2 + $0x30] sm:$0xff] }
  0xbe   : > { %2937 = vmatprep.subr.bf16.mxu1 %v3209_v7  ;;  %v1700_v47 = vpack.c.bf16 %v2634_v41, %v2632_v40  ;;  %v2636_v50 = vsel %vm1610_vm4, 1.0, %v3609_v37  ;;  %v2638_v51 = vsel %vm1612_vm5, 1.0, %v3609_v37  ;;  %v4023_v52 = vrot.slane %v1574_v29, %v1600_v34  ;;  %v3224_v0 = vld [vmem:[#allocation5 + $0x30] sm:$0xff]  }
  0xbf   : > { %1842 = vxpose.xlu0.c.b16.start [1/8] %v1698_v43, 128  ;;  %vm1614_vm6 = vcmp.eq.s32.totalorder %v3991_v32, %v3988_v31  ;;  %vm1616_vm7 = vcmp.eq.s32.totalorder %v4013_v44, %v3988_v31  ;;  %v1702_v54 = vpack.c.bf16 %v2638_v51, %v2636_v50  ;;  %vm1618_vm8 = vcmp.eq.s32.totalorder %v4016_v48, %v3988_v31 }
  0xc0   : > { %2906 = vmatpush3.bf16.msra.mxu0 %v3208_v6  ;;  %v2640_v58 = vsel %vm1614_vm6, 1.0, %v3609_v37  ;;  %v2642_v59 = vsel %vm1616_vm7, 1.0, %v3609_v37  ;;  %vm1603_vm9 = vcmp.eq.s32.totalorder %v3965_v19, %v4023_v52  ;;  %vm1620_vm10 = vcmp.eq.s32.totalorder %v4030_v53, %v3988_v31 }
  0xc1   : > { %2938 = vmatpush3.bf16.msra.mxu1 %v3209_v7  ;;  %2907 = vmatprep.subr.bf16.mxu0 %v3210_v8  ;;  %vm1605_vm11 = vcmp.eq.s32.totalorder %v3968_v22, %v4023_v52  ;;  %v2629_v62 = vsel %vm1603_vm9, 1.0, %v3609_v37  ;;  %vm1607_vm12 = vcmp.eq.s32.totalorder %v3972_v26, %v4023_v52  ;;  %vm1609_vm13 = vcmp.eq.s32.totalorder %v3975_v27, %v4023_v52 }
  0xc2   : > { %2939 = vmatprep.subr.bf16.mxu1 %v3211_v9  ;;  %v2631_v1 = vsel %vm1605_vm11, 1.0, %v3609_v37  ;;  %v1704_v2 = vpack.c.bf16 %v2642_v59, %v2640_v58  ;;  %v2633_v4 = vsel %vm1607_vm12, 1.0, %v3609_v37  ;;  %v2635_v5 = vsel %vm1609_vm13, 1.0, %v3609_v37 }
  0xc3   : > { %1843 = vxpose.xlu0.c.b16.cont [2/8] %v1700_v47, 128  ;;  %v1699_v3 = vpack.c.bf16 %v2631_v1, %v2629_v62  ;;  %v2644_v6 = vsel %vm1618_vm8, 1.0, %v3609_v37  ;;  %v2646_v7 = vsel %vm1620_vm10, 1.0, %v3609_v37  ;;  %vm1611_vm14 = vcmp.eq.s32.totalorder %v3978_v28, %v4023_v52  ;;  %v3228_v47 = vld [vmem:[#allocation5 + $0x50] sm:$0xff]  }
  0xc4   : > { %2908 = vmatpush3.bf16.msra.mxu0 %v3210_v8  ;;  %vm1613_vm15 = vcmp.eq.s32.totalorder %v3984_v30, %v4023_v52  ;;  %v3238_v8 = vld [vmem:[%s3912_s29 + $0x20] sm:$0xff]   ;;  %vm1622_vm0 = vcmp.eq.s32.totalorder %v4033_v55, %v3988_v31  ;;  %vm1624_vm1 = vcmp.eq.s32.totalorder %v4036_v56, %v3988_v31  ;;  %v1701_v11 = vpack.c.bf16 %v2635_v5, %v2633_v4  ;;  %v3240_v4 = vld [vmem:[%s3912_s29 + $0x30] sm:$0xff]   ;;  %v3241_v5 = vld [vmem:[%s3912_s29 + $0x38] sm:$0xff]  }
  0xc5   : > { %2940 = vmatpush3.bf16.msra.mxu1 %v3211_v9  ;;  %2909 = vmatprep.subr.bf16.mxu0 %v3212_v10  ;;  %v4075_v9 = vadd.s32 96, %v3965_v19  ;;  %v2637_v13 = vsel %vm1611_vm14, 1.0, %v3609_v37  ;;  %v2650_v16 = vsel %vm1624_vm1, 1.0, %v3609_v37  ;;  %vm1615_vm2 = vcmp.eq.s32.totalorder %v3991_v32, %v4023_v52 }
  0xc6   : > { %2941 = vmatprep.subr.bf16.mxu1 %v3213_v12  ;;  %1858 = vxpose.xlu1.c.b16.start [1/8] %v1699_v3, 128  ;;  %vm1617_vm3 = vcmp.eq.s32.totalorder %v4013_v44, %v4023_v52  ;;  %vm1619_vm6 = vcmp.eq.s32.totalorder %v4016_v48, %v4023_v52  ;;  %vm1621_vm7 = vcmp.eq.s32.totalorder %v4030_v53, %v4023_v52  ;;  %v3232_v3 = vld [vmem:[#allocation5 + $0x70] sm:$0xff]  }
  0xc7   : > { %1844 = vxpose.xlu0.c.b16.cont [3/8] %v1702_v54, 128  ;;  %vm1626_vm4 = vcmp.eq.s32.totalorder %v4075_v9, %v3988_v31  ;;  %v2647_v43 = vsel %vm1621_vm7, 1.0, %v3609_v37  ;;  %vm1623_vm10 = vcmp.eq.s32.totalorder %v4033_v55, %v4023_v52  ;;  %vm1625_vm11 = vcmp.eq.s32.totalorder %v4036_v56, %v4023_v52 }
  0xc8   : > { %2910 = vmatpush3.bf16.msra.mxu0 %v3212_v10  ;;  %v4078_v10 = vadd.s32 104, %v3965_v19  ;;  %v2652_v38 = vsel %vm1626_vm4, 1.0, %v3609_v37  ;;  %v2649_v51 = vsel %vm1623_vm10, 1.0, %v3609_v37  ;;  %v2651_v54 = vsel %vm1625_vm11, 1.0, %v3609_v37 }
  0xc9   : > { %2942 = vmatpush3.bf16.msra.mxu1 %v3213_v12  ;;  %2911 = vmatprep.subr.bf16.mxu0 %v3214_v14  ;;  %v1706_v12 = vpack.c.bf16 %v2646_v7, %v2644_v6  ;;  %vm1627_vm12 = vcmp.eq.s32.totalorder %v4075_v9, %v4023_v52 }
  0xca   : > { %2943 = vmatprep.subr.bf16.mxu1 %v3215_v15  ;;  %vm1628_vm5 = vcmp.eq.s32.totalorder %v4078_v10, %v3988_v31  ;;  %1859 = vxpose.xlu1.c.b16.cont [2/8] %v1701_v11, 128  ;;  %vm1629_vm13 = vcmp.eq.s32.totalorder %v4078_v10, %v4023_v52  ;;  %v2653_v58 = vsel %vm1627_vm12, 1.0, %v3609_v37 }
  0xcb   : > { %1845 = vxpose.xlu0.c.b16.cont [4/8] %v1704_v2, 128  ;;  %v2654_v39 = vsel %vm1628_vm5, 1.0, %v3609_v37  ;;  %v2655_v59 = vsel %vm1629_vm13, 1.0, %v3609_v37  ;;  %v3231_v2 = vld [vmem:[#allocation5 + $0x68] sm:$0xff]  }
  0xcc   : > { %2912 = vmatpush3.bf16.msra.mxu0 %v3214_v14  ;;  %v2639_v14 = vsel %vm1613_vm15, 1.0, %v3609_v37  ;;  %v1710_v41 = vpack.c.bf16 %v2654_v39, %v2652_v38  ;;  %v1711_v62 = vpack.c.bf16 %v2655_v59, %v2653_v58 }
  0xcd   : > { %2944 = vmatpush3.bf16.msra.mxu1 %v3215_v15  ;;  %2913 = vmatprep.subr.bf16.mxu0 %v3216_v17  ;;  %v2648_v15 = vsel %vm1622_vm0, 1.0, %v3609_v37  ;;  %v1703_v29 = vpack.c.bf16 %v2639_v14, %v2637_v13 }
  0xce   : > { %2945 = vmatprep.subr.bf16.mxu1 %v3217_v18 }
  0xcf   : > { %1846 = vxpose.xlu0.c.b16.cont [5/8] %v1706_v12, 128  ;;  %1860 = vxpose.xlu1.c.b16.cont [3/8] %v1703_v29, 128 }
  0xd0   : > { %2914 = vmatpush3.bf16.msra.mxu0 %v3216_v17  ;;  %v3239_v17 = vld [vmem:[%s3912_s29 + $0x28] sm:$0xff]  }
  0xd1   : > { %2946 = vmatpush3.bf16.msra.mxu1 %v3217_v18  ;;  %2979 = vmatprep.subr.bf16.mxu0 %v3234_v33  ;;  %v548_v18 = vld [vmem:[#allocation2 + $0x38] sm:$0xff] }
  0xd3   : > { %2916 = vmatmul.mubr.bf16.vlgmr.msra.gmra.mrb[0].mxu0 %v542_v20  ;;  %v3225_v20 = vld [vmem:[#allocation5 + $0x38] sm:$0xff]  }
  0xd4   : > { %2948 = vmatmul.mubr.bf16.vlgmr.msra.gmra.mrb[0].mxu1 %v3219_v21  ;;  %2919 = vmatprep.mubr.bf16.mxu0 %v543_v23  ;;  %v4094_v21 = vadd.s32 112, %v3965_v19  ;;  %v4097_v23 = vadd.s32 120, %v3965_v19 }
  0xd5   : > { %2951 = vmatprep.mubr.bf16.mxu1 %v3220_v25  ;;  %2980 = vmatpush3.bf16.msra.mxu0 %v3234_v33  ;;  %v3226_v25 = vld [vmem:[#allocation5 + $0x40] sm:$0xff]   ;;  %v1708_v33 = vpack.c.bf16 %v2650_v16, %v2648_v15 }
  0xd6   : > { %2981 = vmatprep.subr.bf16.mxu0 %v3235_v35  ;;  %vm1630_vm8 = vcmp.eq.s32.totalorder %v4094_v21, %v3988_v31  ;;  %vm1632_vm9 = vcmp.eq.s32.totalorder %v4097_v23, %v3988_v31  ;;  %v3227_v31 = vld [vmem:[#allocation5 + $0x48] sm:$0xff]   ;;  %vm1631_vm14 = vcmp.eq.s32.totalorder %v4094_v21, %v4023_v52  ;;  %vm1633_vm15 = vcmp.eq.s32.totalorder %v4097_v23, %v4023_v52  ;;  %v3233_v52 = vld [vmem:[#allocation5 + $0x78] sm:$0xff]  }
  0xd7   : > { %1847 = vxpose.xlu0.c.b16.cont [6/8] %v1708_v33, 128 }
  0xd9   : > { %2982 = vmatpush3.bf16.msra.mxu0 %v3235_v35  ;;  %v2641_v35 = vsel %vm1615_vm2, 1.0, %v3609_v37 }
  0xda   : > { %2983 = vmatprep.subr.bf16.mxu0 %v3236_v49 }
  0xdb   : > { %2920 = vmatmul.mubr.bf16.gmra.mrb[4].mxu0 %v544_v36  ;;  %v2643_v36 = vsel %vm1617_vm3, 1.0, %v3609_v37  ;;  %1848 = vxpose.xlu0.c.b16.cont [7/8] %v1710_v41, 128 }
  0xdc   : > { %2952 = vmatmul.mubr.bf16.gmra.mrb[4].mxu1 %v3221_v42  ;;  %2923 = vmatprep.mubr.bf16.mxu0 %v545_v45  ;;  %v1705_v40 = vpack.c.bf16 %v2643_v36, %v2641_v35  ;;  %v2645_v42 = vsel %vm1619_vm6, 1.0, %v3609_v37  ;;  %v2656_v45 = vsel %vm1630_vm8, 1.0, %v3609_v37 }
  0xdd   : > { %2955 = vmatprep.mubr.bf16.mxu1 %v3222_v46  ;;  %2984 = vmatpush3.bf16.msra.mxu0 %v3236_v49  ;;  %v2658_v46 = vsel %vm1632_vm9, 1.0, %v3609_v37  ;;  %v1707_v49 = vpack.c.bf16 %v2647_v43, %v2645_v42 }
  0xde   : > { %2985 = vmatprep.subr.bf16.mxu0 %v3237_v57  ;;  %1861 = vxpose.xlu1.c.b16.cont [4/8] %v1705_v40, 128  ;;  %v1712_v50 = vpack.c.bf16 %v2658_v46, %v2656_v45 }
  0xe0   : > { %1849 = vxpose.xlu0.c.b16.end [8/8] %v1712_v50, 128 }
  0xe1   : > { %2986 = vmatpush3.bf16.msra.mxu0 %v3237_v57  ;;  %v1709_v57 = vpack.c.bf16 %v2651_v54, %v2649_v51 }
  0xe2   : > { %2987 = vmatprep.subr.bf16.mxu0 %v3238_v8  ;;  %1862 = vxpose.xlu1.c.b16.cont [5/8] %v1707_v49, 128 }
  0xe3   : > { %2924 = vmatmul.mubr.bf16.gmra.mrb[8].mxu0 %v546_v60  ;;  %v3229_v60 = vld [vmem:[#allocation5 + $0x58] sm:$0xff]  }
  0xe4   : > { %2956 = vmatmul.mubr.bf16.gmra.mrb[8].mxu1 %v3223_v61  ;;  %2927 = vmatprep.mubr.bf16.mxu0 %v547_v63  ;;  %v3230_v61 = vld [vmem:[#allocation5 + $0x60] sm:$0xff]   ;;  %v2657_v63 = vsel %vm1631_vm14, 1.0, %v3609_v37 }
  0xe5   : > { %2959 = vmatprep.mubr.bf16.mxu1 %v3224_v0  ;;  %2988 = vmatpush3.bf16.msra.mxu0 %v3238_v8  ;;  %v2659_v0 = vsel %vm1633_vm15, 1.0, %v3609_v37  ;;  %v4140_v37 = vld [vmem:[%s510_s22] ss:$0 sm:$0xff] }
  0xe6   : > { %2989 = vmatprep.subr.bf16.mxu0 %v3239_v17  ;;  %1863 = vxpose.xlu1.c.b16.cont [6/8] %v1709_v57, 128  ;;  %v1713_v1 = vpack.c.bf16 %v2659_v0, %v2657_v63 }
  0xe9   : > { %2990 = vmatpush3.bf16.msra.mxu0 %v3239_v17 }
  0xea   : > { %1864 = vxpose.xlu1.c.b16.cont [7/8] %v1711_v62, 128  ;;  %2991 = vmatprep.subr.bf16.mxu0 %v3240_v4 }
  0xeb   : > { %2928 = vmatmul.mubr.bf16.gmra.mrb[12].mxu0 %v548_v18 }
  0xec   : > { %2960 = vmatmul.mubr.bf16.gmra.mrb[12].mxu1 %v3225_v20 }
  0xed   : > { %2963 = vmatprep.mubr.bf16.mxu1 %v3226_v25  ;;  %2992 = vmatpush3.bf16.msra.mxu0 %v3240_v4 }
  0xee   : > { %1865 = vxpose.xlu1.c.b16.end [8/8] %v1713_v1, 128  ;;  %2993 = vmatprep.subr.bf16.mxu0 %v3241_v5 }
  0xf1   : > { %2994 = vmatpush3.bf16.msra.mxu0 %v3241_v5 }
  0xf4   : > { %2964 = vmatmul.mubr.bf16.gmra.mrb[16].mxu1 %v3227_v31 }
  0xf5   : > { %2967 = vmatprep.mubr.bf16.mxu1 %v3228_v47 }
  0xfc   : > { %2968 = vmatmul.mubr.bf16.gmra.mrb[20].mxu1 %v3229_v60 }
  0xfd   : > { %2971 = vmatprep.mubr.bf16.mxu1 %v3230_v61 }
 0x104   : > { %2972 = vmatmul.mubr.bf16.gmra.mrb[24].mxu1 %v3231_v2 }
 0x105   : > { %2975 = vmatprep.mubr.bf16.mxu1 %v3232_v3 }
 0x10c   : > { %2976 = vmatmul.mubr.bf16.gmra.mrb[28].mxu1 %v3233_v52 }
 0x12a   : > { %v1850_v6 = vpop.trf.xlu0 }
 0x12b   : > { %3043 = vmatprep.mubr.bf16.mxu1 %v1850_v6 }
 0x1a6   : > { %v2917_v7 = vpop.f32.mrb[0].mxu0 }
 0x1a7   : > { %v2949_v8 = vpop.f32.mrb[0].mxu1  ;;  %v647_v11 = vpop.f32.mrb[1].mxu0 }
 0x1a8   : > { %v984_v12 = vadd.f32 %v2949_v8, %v4140_v37  ;;  %v975_v13 = vpop.f32.mrb[1].mxu1  ;;  %v2918_v14 = vpop.f32.mrb[2].mxu0 }
 0x1a9   : > { %v976_v15 = vadd.f32 %v4140_v37, %v975_v13  ;;  %v711_v16 = vpack.c.bf16 %v2918_v14, %v2917_v7  ;;  %v2950_v17 = vpop.f32.mrb[2].mxu1  ;;  %v650_v18 = vpop.f32.mrb[3].mxu0 }
 0x1aa   : > { %v987_v20 = vadd.f32 %v2950_v17, %v4140_v37  ;;  %v710_v25 = vpack.c.bf16 %v650_v18, %v647_v11  ;;  %v978_v29 = vpop.f32.mrb[3].mxu1  ;;  %v1104_v35 = vmax.f32 %v984_v12, 0.0 }
 0x1ab   : > { %v979_v33 = vadd.f32 %v4140_v37, %v978_v29  ;;  %v1102_v38 = vmax.f32 %v976_v15, 0.0 }
 0x1ac   : > { %v1105_v36 = vmax.f32 %v987_v20, 0.0  ;;  %3027 = vmatprep.subr.bf16.mxu1 %v710_v25 }
 0x1ad   : > { %v1103_v39 = vmax.f32 %v979_v33, 0.0  ;;  %3028 = vmatpush3.bf16.msra.mxu1 %v710_v25  ;;  %v1851_v25 = vpop.trf.xlu0 }
 0x1ae   : > { %v1135_v40 = vpack.c.bf16 %v1105_v36, %v1104_v35  ;;  %v2921_v41 = vpop.f32.mrb[4].mxu0  ;;  %3029 = vmatprep.subr.bf16.mxu1 %v711_v16 }
 0x1af   : > { %v1134_v42 = vpack.c.bf16 %v1103_v39, %v1102_v38  ;;  %v2953_v43 = vpop.f32.mrb[4].mxu1  ;;  %v663_v45 = vpop.f32.mrb[5].mxu0 }
 0x1b0   : > { %v1000_v46 = vadd.f32 %v2953_v43, %v4140_v37  ;;  %v991_v31 = vpop.f32.mrb[5].mxu1  ;;  %v2922_v47 = vpop.f32.mrb[6].mxu0 }
 0x1b1   : > { %v992_v49 = vadd.f32 %v4140_v37, %v991_v31  ;;  %v713_v50 = vpack.c.bf16 %v2922_v47, %v2921_v41  ;;  %v2954_v51 = vpop.f32.mrb[6].mxu1  ;;  %2995 = vmatprep.mubr.bf16.mxu0 %v1134_v42  ;;  %v666_v54 = vpop.f32.mrb[7].mxu0  ;;  %3030 = vmatpush3.bf16.msra.mxu1 %v711_v16 }
 0x1b2   : > { %v1003_v57 = vadd.f32 %v2954_v51, %v4140_v37  ;;  %v712_v58 = vpack.c.bf16 %v666_v54, %v663_v45  ;;  %v994_v59 = vpop.f32.mrb[7].mxu1  ;;  %2996 = vmatmul.mubr.bf16.vlgmr.msra.gmra.mrb[16].mxu0 %v1135_v40  ;;  %v1108_v61 = vmax.f32 %v1000_v46, 0.0  ;;  %v1852_v54 = vpop.trf.xlu0 }
 0x1b3   : > { %v995_v60 = vadd.f32 %v4140_v37, %v994_v59  ;;  %v1106_v63 = vmax.f32 %v992_v49, 0.0 }
 0x1b4   : > { %v1109_v62 = vmax.f32 %v1003_v57, 0.0  ;;  %3031 = vmatprep.subr.bf16.mxu1 %v712_v58 }
 0x1b5   : > { %v1107_v0 = vmax.f32 %v995_v60, 0.0  ;;  %3032 = vmatpush3.bf16.msra.mxu1 %v712_v58 }
 0x1b6   : > { %v1137_v1 = vpack.c.bf16 %v1109_v62, %v1108_v61  ;;  %v2925_v2 = vpop.f32.mrb[8].mxu0  ;;  %3033 = vmatprep.subr.bf16.mxu1 %v713_v50 }
 0x1b7   : > { %v1136_v3 = vpack.c.bf16 %v1107_v0, %v1106_v63  ;;  %v2957_v52 = vpop.f32.mrb[8].mxu1  ;;  %v679_v4 = vpop.f32.mrb[9].mxu0 }
 0x1b8   : > { %v1016_v5 = vadd.f32 %v2957_v52, %v4140_v37  ;;  %v1007_v6 = vpop.f32.mrb[9].mxu1  ;;  %v2926_v7 = vpop.f32.mrb[10].mxu0 }
 0x1b9   : > { %v1008_v8 = vadd.f32 %v4140_v37, %v1007_v6  ;;  %v715_v11 = vpack.c.bf16 %v2926_v7, %v2925_v2  ;;  %v2958_v12 = vpop.f32.mrb[10].mxu1  ;;  %2999 = vmatprep.mubr.bf16.mxu0 %v1136_v3  ;;  %v682_v13 = vpop.f32.mrb[11].mxu0  ;;  %3034 = vmatpush3.bf16.msra.mxu1 %v713_v50 }
 0x1ba   : > { %v1019_v14 = vadd.f32 %v2958_v12, %v4140_v37  ;;  %v714_v15 = vpack.c.bf16 %v682_v13, %v679_v4  ;;  %v1010_v16 = vpop.f32.mrb[11].mxu1  ;;  %3000 = vmatmul.mubr.bf16.gmra.mrb[20].mxu0 %v1137_v1  ;;  %v1112_v18 = vmax.f32 %v1016_v5, 0.0  ;;  %v1853_v3 = vpop.trf.xlu0 }
 0x1bb   : > { %v1011_v17 = vadd.f32 %v4140_v37, %v1010_v16  ;;  %v1110_v29 = vmax.f32 %v1008_v8, 0.0 }
 0x1bc   : > { %v1113_v20 = vmax.f32 %v1019_v14, 0.0  ;;  %3035 = vmatprep.subr.bf16.mxu1 %v714_v15 }
 0x1bd   : > { %v1111_v33 = vmax.f32 %v1011_v17, 0.0  ;;  %3036 = vmatpush3.bf16.msra.mxu1 %v714_v15 }
 0x1be   : > { %v1139_v35 = vpack.c.bf16 %v1113_v20, %v1112_v18  ;;  %v2929_v36 = vpop.f32.mrb[12].mxu0  ;;  %3037 = vmatprep.subr.bf16.mxu1 %v715_v11  ;;  %v1854_v15 = vpop.trf.xlu0 }
 0x1bf   : > { %v1138_v38 = vpack.c.bf16 %v1111_v33, %v1110_v29  ;;  %v2961_v39 = vpop.f32.mrb[12].mxu1  ;;  %v695_v40 = vpop.f32.mrb[13].mxu0 }
 0x1c0   : > { %v1032_v41 = vadd.f32 %v2961_v39, %v4140_v37  ;;  %v1023_v42 = vpop.f32.mrb[13].mxu1  ;;  %v2930_v43 = vpop.f32.mrb[14].mxu0 }
 0x1c1   : > { %v1024_v45 = vadd.f32 %v4140_v37, %v1023_v42  ;;  %v717_v46 = vpack.c.bf16 %v2930_v43, %v2929_v36  ;;  %v2962_v31 = vpop.f32.mrb[14].mxu1  ;;  %3003 = vmatprep.mubr.bf16.mxu0 %v1138_v38  ;;  %v698_v47 = vpop.f32.mrb[15].mxu0  ;;  %3038 = vmatpush3.bf16.msra.mxu1 %v715_v11 }
 0x1c2   : > { %v1035_v49 = vadd.f32 %v2962_v31, %v4140_v37  ;;  %v716_v50 = vpack.c.bf16 %v698_v47, %v695_v40  ;;  %v1026_v51 = vpop.f32.mrb[15].mxu1  ;;  %3004 = vmatmul.mubr.bf16.gmra.mrb[24].mxu0 %v1139_v35  ;;  %v1116_v58 = vmax.f32 %v1032_v41, 0.0  ;;  %v1855_v40 = vpop.trf.xlu0 }
 0x1c3   : > { %v1027_v57 = vadd.f32 %v4140_v37, %v1026_v51  ;;  %v1114_v60 = vmax.f32 %v1024_v45, 0.0  ;;  %v1866_v45 = vpop.trf.xlu1 }
 0x1c4   : > { %v1117_v59 = vmax.f32 %v1035_v49, 0.0  ;;  %3039 = vmatprep.subr.bf16.mxu1 %v716_v50 }
 0x1c5   : > { %v1115_v61 = vmax.f32 %v1027_v57, 0.0  ;;  %3040 = vmatpush3.bf16.msra.mxu1 %v716_v50 }
 0x1c6   : > { %v1141_v62 = vpack.c.bf16 %v1117_v59, %v1116_v58  ;;  %3041 = vmatprep.subr.bf16.mxu1 %v717_v46  ;;  %v1856_v58 = vpop.trf.xlu0 }
 0x1c7   : > { %v1140_v63 = vpack.c.bf16 %v1115_v61, %v1114_v60  ;;  %v2965_v0 = vpop.f32.mrb[16].mxu1 }
 0x1c8   : > { %v1048_v1 = vadd.f32 %v2965_v0, %v4140_v37  ;;  %v1039_v2 = vpop.f32.mrb[17].mxu1 }
 0x1c9   : > { %v1040_v52 = vadd.f32 %v4140_v37, %v1039_v2  ;;  %v2966_v4 = vpop.f32.mrb[18].mxu1  ;;  %3007 = vmatprep.mubr.bf16.mxu0 %v1140_v63  ;;  %3042 = vmatpush3.bf16.msra.mxu1 %v717_v46 }
 0x1ca   : > { %v1051_v5 = vadd.f32 %v2966_v4, %v4140_v37  ;;  %v1042_v6 = vpop.f32.mrb[19].mxu1  ;;  %3008 = vmatmul.mubr.bf16.gmra.mrb[28].mxu0 %v1141_v62  ;;  %v1120_v8 = vmax.f32 %v1048_v1, 0.0  ;;  %v1867_v62 = vpop.trf.xlu1 }
 0x1cb   : > { %v1043_v7 = vadd.f32 %v4140_v37, %v1042_v6  ;;  %v1118_v12 = vmax.f32 %v1040_v52, 0.0 }
 0x1cc   : > { %v1121_v11 = vmax.f32 %v1051_v5, 0.0  ;;  %3044 = vmatmul.mubr.bf16.vlgmr.msra.gmra.mrb[32].mxu1 %v1851_v25 }
 0x1cd   : > { %v1119_v13 = vmax.f32 %v1043_v7, 0.0  ;;  %3047 = vmatprep.mubr.bf16.mxu1 %v1852_v54  ;;  %v1857_v7 = vpop.trf.xlu0 }
 0x1ce   : > { %v1143_v14 = vpack.c.bf16 %v1121_v11, %v1120_v8 }
 0x1cf   : > { %v1142_v16 = vpack.c.bf16 %v1119_v13, %v1118_v12  ;;  %v2969_v17 = vpop.f32.mrb[20].mxu1  ;;  %v1868_v12 = vpop.trf.xlu1 }
 0x1d0   : > { %v1064_v18 = vadd.f32 %v2969_v17, %v4140_v37  ;;  %v1055_v20 = vpop.f32.mrb[21].mxu1 }
 0x1d1   : > { %v1056_v29 = vadd.f32 %v4140_v37, %v1055_v20  ;;  %v2970_v33 = vpop.f32.mrb[22].mxu1  ;;  %3011 = vmatprep.mubr.bf16.mxu0 %v1142_v16 }
 0x1d2   : > { %v1067_v35 = vadd.f32 %v2970_v33, %v4140_v37  ;;  %v1058_v36 = vpop.f32.mrb[23].mxu1  ;;  %3012 = vmatmul.mubr.bf16.gmra.mrb[32].mxu0 %v1143_v14  ;;  %v1124_v38 = vmax.f32 %v1064_v18, 0.0 }
 0x1d3   : > { %v1059_v25 = vadd.f32 %v4140_v37, %v1058_v36  ;;  %v1122_v41 = vmax.f32 %v1056_v29, 0.0  ;;  %v1869_v29 = vpop.trf.xlu1 }
 0x1d4   : > { %v1125_v39 = vmax.f32 %v1067_v35, 0.0  ;;  %3048 = vmatmul.mubr.bf16.gmra.mrb[36].mxu1 %v1853_v3 }
 0x1d5   : > { %v1123_v42 = vmax.f32 %v1059_v25, 0.0  ;;  %3051 = vmatprep.mubr.bf16.mxu1 %v1854_v15  ;;  %v4177_v25 = vld [vmem:[%s4450_s2 + $0x1] ss:$2 sm:$0x3] }
 0x1d6   : > { %v1145_v43 = vpack.c.bf16 %v1125_v39, %v1124_v38  ;;  %v4182_v38 = vrot.slane %v4177_v25, %v1600_v34  ;;  %v3610_v39 = vmov 1.0|1.0  }
 0x1d7   : > { %v1144_v46 = vpack.c.bf16 %v1123_v42, %v1122_v41  ;;  %v2973_v31 = vpop.f32.mrb[24].mxu1  ;;  %v1870_v33 = vpop.trf.xlu1 }
 0x1d8   : > { %v1080_v47 = vadd.f32 %v2973_v31, %v4140_v37  ;;  %v1071_v49 = vpop.f32.mrb[25].mxu1  ;;  %vm1723_vm0 = vcmp.eq.s32.totalorder %v3965_v19, %v4182_v38  ;;  %vm1725_vm1 = vcmp.eq.s32.totalorder %v3968_v22, %v4182_v38  ;;  %vm1747_vm3 = vcmp.eq.s32.totalorder %v4075_v9, %v4182_v38 }
 0x1d9   : > { %v1072_v50 = vadd.f32 %v4140_v37, %v1071_v49  ;;  %v2974_v51 = vpop.f32.mrb[26].mxu1  ;;  %3015 = vmatprep.mubr.bf16.mxu0 %v1144_v46  ;;  %vm2692_vm2 = vmpackc.low %vm1725_vm1, %vm1723_vm0  ;;  %vm1749_vm4 = vcmp.eq.s32.totalorder %v4078_v10, %v4182_v38  ;;  %vm1727_vm8 = vcmp.eq.s32.totalorder %v3972_v26, %v4182_v38  ;;  %vm1729_vm9 = vcmp.eq.s32.totalorder %v3975_v27, %v4182_v38 }
 0x1da   : > { %v1083_v54 = vadd.f32 %v2974_v51, %v4140_v37  ;;  %v1074_v57 = vpop.f32.mrb[27].mxu1  ;;  %3016 = vmatmul.mubr.bf16.gmra.mrb[36].mxu0 %v1145_v43  ;;  %v1128_v60 = vmax.f32 %v1080_v47, 0.0  ;;  %vm2716_vm5 = vmpackc.low %vm1749_vm4, %vm1747_vm3  ;;  %vm1751_vm13 = vcmp.eq.s32.totalorder %v4094_v21, %v4182_v38  ;;  %vm1753_vm14 = vcmp.eq.s32.totalorder %v4097_v23, %v4182_v38 }
 0x1db   : > { %v1075_v59 = vadd.f32 %v4140_v37, %v1074_v57  ;;  %v1126_v63 = vmax.f32 %v1072_v50, 0.0  ;;  %v1871_v35 = vpop.trf.xlu1  ;;  %vm2696_vm15 = vmpackc.low %vm1729_vm9, %vm1727_vm8 }
 0x1dc   : > { %v1129_v61 = vmax.f32 %v1083_v54, 0.0  ;;  %3052 = vmatmul.mubr.bf16.gmra.mrb[40].mxu1 %v1855_v40  ;;  %v4194_v40 = vld [vmem:[%s513_s6] ss:$0 sm:$0xff]  ;;  %vm2720_vm1 = vmpackc.low %vm1753_vm14, %vm1751_vm13  ;;  %vm1735_vm13 = vcmp.eq.s32.totalorder %v3991_v32, %v4182_v38  ;;  %vm1737_vm14 = vcmp.eq.s32.totalorder %v4013_v44, %v4182_v38 }
 0x1dd   : > { %v1127_v0 = vmax.f32 %v1075_v59, 0.0  ;;  %3055 = vmatprep.mubr.bf16.mxu1 %v1856_v58 }
 0x1de   : > { %v1147_v1 = vpack.c.bf16 %v1129_v61, %v1128_v60 }
 0x1df   : > { %v1146_v2 = vpack.c.bf16 %v1127_v0, %v1126_v63  ;;  %v2977_v3 = vpop.f32.mrb[28].mxu1  ;;  %v1872_v36 = vpop.trf.xlu1 }
 0x1e0   : > { %v1096_v52 = vadd.f32 %v2977_v3, %v4140_v37  ;;  %v1087_v4 = vpop.f32.mrb[29].mxu1 }
 0x1e1   : > { %v1088_v5 = vadd.f32 %v4140_v37, %v1087_v4  ;;  %v2978_v6 = vpop.f32.mrb[30].mxu1  ;;  %3019 = vmatprep.mubr.bf16.mxu0 %v1146_v2 }
 0x1e2   : > { %v1099_v8 = vadd.f32 %v2978_v6, %v4140_v37  ;;  %v1090_v11 = vpop.f32.mrb[31].mxu1  ;;  %3020 = vmatmul.mubr.bf16.gmra.mrb[40].mxu0 %v1147_v1  ;;  %v1132_v14 = vmax.f32 %v1096_v52, 0.0 }
 0x1e3   : > { %v1091_v13 = vadd.f32 %v4140_v37, %v1090_v11  ;;  %v1130_v16 = vmax.f32 %v1088_v5, 0.0  ;;  %v1873_v37 = vpop.trf.xlu1 }
 0x1e4   : > { %v1133_v15 = vmax.f32 %v1099_v8, 0.0  ;;  %3056 = vmatmul.mubr.bf16.gmra.mrb[44].mxu1 %v1857_v7 }
 0x1e5   : > { %v1131_v17 = vmax.f32 %v1091_v13, 0.0  ;;  %3059 = vmatprep.mubr.bf16.mxu1 %v1866_v45 }
 0x1e6   : > { %v1149_v18 = vpack.c.bf16 %v1133_v15, %v1132_v14 }
 0x1e7   : > { %v1148_v20 = vpack.c.bf16 %v1131_v17, %v1130_v16 }
 0x1e9   : > { %3023 = vmatprep.mubr.bf16.mxu0 %v1148_v20 }
 0x1ea   : > { %3024 = vmatmul.mubr.bf16.gmra.mrb[44].mxu0 %v1149_v18 }
 0x1eb   : > { %2693 = vmatprep.mubr.msk.bf16.mxu0 %vm2692_vm2, %v3610_v39 }
 0x1ec   : > { %3060 = vmatmul.mubr.bf16.gmra.mrb[48].mxu1 %v1867_v62 }
 0x1ed   : > { %3063 = vmatprep.mubr.bf16.mxu1 %v1868_v12 }
 0x1f4   : > { %3064 = vmatmul.mubr.bf16.gmra.mrb[52].mxu1 %v1869_v29 }
 0x1f5   : > { %3067 = vmatprep.mubr.bf16.mxu1 %v1870_v33 }
 0x1fc   : > { %3068 = vmatmul.mubr.bf16.gmra.mrb[56].mxu1 %v1871_v35 }
 0x1fd   : > { %3071 = vmatprep.mubr.bf16.mxu1 %v1872_v36 }
 0x204   : > { %3072 = vmatmul.mubr.bf16.gmra.mrb[60].mxu1 %v1873_v37 }
 0x205   : > { %2717 = vmatprep.mubr.msk.bf16.mxu1 %vm2716_vm5, %v3610_v39 }
 0x285   : > { %v2997_v41 = vpop.f32.mrb[16].mxu0 }
 0x286   : > { %v1264_v34 = vadd.f32 %v2997_v41, %v4194_v40  ;;  %v1255_v42 = vpop.f32.mrb[17].mxu0 }
 0x287   : > { %v1256_v43 = vadd.f32 %v4194_v40, %v1255_v42  ;;  %v2998_v45 = vpop.f32.mrb[18].mxu0 }
 0x288   : > { %v2597_v46 = vmul.f32 -1.442695, %v1264_v34  ;;  %v1267_v31 = vadd.f32 %v2998_v45, %v4194_v40  ;;  %v1258_v47 = vpop.f32.mrb[19].mxu0 }
 0x289   : > { %v2595_v49 = vmul.f32 -1.442695, %v1256_v43  ;;  %v1259_v50 = vadd.f32 %v4194_v40, %v1258_v47 }
 0x28a   : > { %3242 = vpow2.f32 %v2597_v46  ;;  %v2598_v51 = vmul.f32 -1.442695, %v1267_v31 }
 0x28b   : > { %3244 = vpow2.f32 %v2595_v49  ;;  %v2596_v54 = vmul.f32 -1.442695, %v1259_v50 }
 0x28c   : > { %3246 = vpow2.f32 %v2598_v51 }
 0x28d   : > { %3248 = vpow2.f32 %v2596_v54  ;;  %v3001_v57 = vpop.f32.mrb[20].mxu0 }
 0x28e   : > { %v1280_v58 = vadd.f32 %v3001_v57, %v4194_v40  ;;  %v1271_v59 = vpop.f32.mrb[21].mxu0 }
 0x28f   : > { %v1272_v60 = vadd.f32 %v4194_v40, %v1271_v59  ;;  %v3002_v61 = vpop.f32.mrb[22].mxu0 }
 0x290   : > { %v2601_v62 = vmul.f32 -1.442695, %v1280_v58  ;;  %v1283_v63 = vadd.f32 %v3002_v61, %v4194_v40  ;;  %v1274_v0 = vpop.f32.mrb[23].mxu0 }
 0x291   : > { %v2599_v1 = vmul.f32 -1.442695, %v1272_v60  ;;  %v1275_v2 = vadd.f32 %v4194_v40, %v1274_v0 }
 0x292   : > { %3250 = vpow2.f32 %v2601_v62  ;;  %v2602_v3 = vmul.f32 -1.442695, %v1283_v63 }
 0x293   : > { %3252 = vpow2.f32 %v2599_v1  ;;  %v2600_v52 = vmul.f32 -1.442695, %v1275_v2 }
 0x294   : > { %v3243_v4 = vpop.eup %3242  ;;  %3254 = vpow2.f32 %v2602_v3 }
 0x295   : > { %v3245_v5 = vpop.eup %3244  ;;  %v1480_v6 = vadd.f32 1.0, %v3243_v4  ;;  %3256 = vpow2.f32 %v2600_v52  ;;  %v3005_v7 = vpop.f32.mrb[24].mxu0 }
 0x296   : > { %v3247_v8 = vpop.eup %3246  ;;  %v1478_v11 = vadd.f32 1.0, %v3245_v5  ;;  %v1296_v12 = vadd.f32 %v3005_v7, %v4194_v40  ;;  %v1287_v13 = vpop.f32.mrb[25].mxu0 }
 0x297   : > { %v3249_v14 = vpop.eup %3248  ;;  %3258 = vrcp.f32 %v1480_v6  ;;  %v1481_v15 = vadd.f32 1.0, %v3247_v8  ;;  %v1288_v16 = vadd.f32 %v4194_v40, %v1287_v13  ;;  %v3006_v17 = vpop.f32.mrb[26].mxu0 }
 0x298   : > { %3260 = vrcp.f32 %v1478_v11  ;;  %v1479_v18 = vadd.f32 1.0, %v3249_v14  ;;  %v2605_v20 = vmul.f32 -1.442695, %v1296_v12  ;;  %v1299_v29 = vadd.f32 %v3006_v17, %v4194_v40  ;;  %v1290_v33 = vpop.f32.mrb[27].mxu0 }
 0x299   : > { %3262 = vrcp.f32 %v1481_v15  ;;  %v2603_v35 = vmul.f32 -1.442695, %v1288_v16  ;;  %v1291_v36 = vadd.f32 %v4194_v40, %v1290_v33 }
 0x29a   : > { %3264 = vrcp.f32 %v1479_v18  ;;  %v2606_v37 = vmul.f32 -1.442695, %v1299_v29 }
 0x29b   : > { %3266 = vpow2.f32 %v2605_v20  ;;  %v2604_v41 = vmul.f32 -1.442695, %v1291_v36 }
 0x29c   : > { %v3251_v34 = vpop.eup %3250  ;;  %3268 = vpow2.f32 %v2603_v35 }
 0x29d   : > { %v3253_v42 = vpop.eup %3252  ;;  %v1484_v43 = vadd.f32 1.0, %v3251_v34  ;;  %3270 = vpow2.f32 %v2606_v37  ;;  %v3009_v45 = vpop.f32.mrb[28].mxu0 }
 0x29e   : > { %v3255_v46 = vpop.eup %3254  ;;  %v1482_v31 = vadd.f32 1.0, %v3253_v42  ;;  %3272 = vpow2.f32 %v2604_v41  ;;  %v1312_v47 = vadd.f32 %v3009_v45, %v4194_v40  ;;  %v1303_v49 = vpop.f32.mrb[29].mxu0 }
 0x29f   : > { %v3257_v50 = vpop.eup %3256  ;;  %3274 = vrcp.f32 %v1484_v43  ;;  %v1485_v51 = vadd.f32 1.0, %v3255_v46  ;;  %v1304_v54 = vadd.f32 %v4194_v40, %v1303_v49  ;;  %v3010_v57 = vpop.f32.mrb[30].mxu0 }
 0x2a0   : > { %v3045_v58 = vpop.f32.mrb[32].mxu1  ;;  %3276 = vrcp.f32 %v1482_v31  ;;  %v1483_v59 = vadd.f32 1.0, %v3257_v50  ;;  %v2609_v60 = vmul.f32 -1.442695, %v1312_v47  ;;  %v1315_v61 = vadd.f32 %v3010_v57, %v4194_v40  ;;  %v1306_v62 = vpop.f32.mrb[31].mxu0 }
 0x2a1   : > { %v1908_v63 = vpop.f32.mrb[33].mxu1  ;;  %v3259_v0 = vpop.eup %3258  ;;  %3278 = vrcp.f32 %v1485_v51  ;;  %v2607_v1 = vmul.f32 -1.442695, %v1304_v54  ;;  %v1307_v2 = vadd.f32 %v4194_v40, %v1306_v62 }
 0x2a2   : > { %v3046_v3 = vpop.f32.mrb[34].mxu1  ;;  %v3261_v52 = vpop.eup %3260  ;;  %3280 = vrcp.f32 %v1483_v59  ;;  %v2610_v4 = vmul.f32 -1.442695, %v1315_v61  ;;  %v2037_v5 = vmul.f32 %v3259_v0, %v3045_v58 }
 0x2a3   : > { %v1911_v6 = vpop.f32.mrb[35].mxu1  ;;  %v3263_v7 = vpop.eup %3262  ;;  %3282 = vpow2.f32 %v2609_v60  ;;  %v2608_v8 = vmul.f32 -1.442695, %v1307_v2  ;;  %v2035_v11 = vmul.f32 %v3261_v52, %v1908_v63 }
 0x2a4   : > { %v3265_v12 = vpop.eup %3264  ;;  %3284 = vpow2.f32 %v2607_v1  ;;  %v2038_v13 = vmul.f32 %v3263_v7, %v3046_v3 }
 0x2a5   : > { %v3267_v14 = vpop.eup %3266  ;;  %3286 = vpow2.f32 %v2610_v4  ;;  %v2036_v15 = vmul.f32 %v3265_v12, %v1911_v6  ;;  %v3013_v16 = vpop.f32.mrb[32].mxu0 }
 0x2a6   : > { %v3269_v17 = vpop.eup %3268  ;;  %v1488_v18 = vadd.f32 1.0, %v3267_v14  ;;  %3288 = vpow2.f32 %v2608_v8  ;;  %v4217_v20 = vpack.c.bf16 %v2038_v13, %v2037_v5  ;;  %v1328_v29 = vadd.f32 %v3013_v16, %v4194_v40  ;;  %v1319_v33 = vpop.f32.mrb[33].mxu0 }
 0x2a7   : > { %v3271_v35 = vpop.eup %3270  ;;  %v1486_v36 = vadd.f32 1.0, %v3269_v17  ;;  %v4220_v37 = vpack.c.bf16 %v2036_v15, %v2035_v11  ;;  %v1320_v41 = vadd.f32 %v4194_v40, %v1319_v33  ;;  %v3014_v34 = vpop.f32.mrb[34].mxu0 }
 0x2a8   : > { %v3049_v42 = vpop.f32.mrb[36].mxu1  ;;  %v3273_v43 = vpop.eup %3272  ;;  %3290 = vrcp.f32 %v1488_v18  ;;  %v1489_v45 = vadd.f32 1.0, %v3271_v35  ;;  %v2613_v46 = vmul.f32 -1.442695, %v1328_v29  ;;  %v1331_v31 = vadd.f32 %v3014_v34, %v4194_v40 }
 0x2a9   : > { %v1322_v47 = vpop.f32.mrb[35].mxu0  ;;  %v1924_v49 = vpop.f32.mrb[37].mxu1  ;;  %3292 = vrcp.f32 %v1486_v36  ;;  %v1487_v51 = vadd.f32 1.0, %v3273_v43  ;;  %v2611_v54 = vmul.f32 -1.442695, %v1320_v41 }
 0x2aa   : > { %v3275_v50 = vpop.eup %3274  ;;  %v1323_v57 = vadd.f32 %v4194_v40, %v1322_v47  ;;  %v3050_v58 = vpop.f32.mrb[38].mxu1  ;;  %3294 = vrcp.f32 %v1489_v45  ;;  %v2614_v60 = vmul.f32 -1.442695, %v1331_v31 }
 0x2ab   : > { %v3277_v59 = vpop.eup %3276  ;;  %v2041_v61 = vmul.f32 %v3275_v50, %v3049_v42  ;;  %v1927_v62 = vpop.f32.mrb[39].mxu1  ;;  %3296 = vrcp.f32 %v1487_v51 }
 0x2ac   : > { %v3279_v63 = vpop.eup %3278  ;;  %v2612_v0 = vmul.f32 -1.442695, %v1323_v57  ;;  %v2039_v1 = vmul.f32 %v3277_v59, %v1924_v49  ;;  %3298 = vpow2.f32 %v2613_v46 }
 0x2ad   : > { %v3281_v2 = vpop.eup %3280  ;;  %v2042_v3 = vmul.f32 %v3279_v63, %v3050_v58  ;;  %3300 = vpow2.f32 %v2611_v54  ;;  %v3017_v5 = vpop.f32.mrb[36].mxu0 }
 0x2ae   : > { %v3283_v52 = vpop.eup %3282  ;;  %v2040_v4 = vmul.f32 %v3281_v2, %v1927_v62  ;;  %3302 = vpow2.f32 %v2614_v60  ;;  %v1344_v11 = vadd.f32 %v3017_v5, %v4194_v40  ;;  %v1335_v12 = vpop.f32.mrb[37].mxu0 }
 0x2af   : > { %v3285_v6 = vpop.eup %3284  ;;  %v1492_v7 = vadd.f32 1.0, %v3283_v52  ;;  %v4225_v8 = vpack.c.bf16 %v2042_v3, %v2041_v61  ;;  %3304 = vpow2.f32 %v2612_v0  ;;  %v1336_v16 = vadd.f32 %v4194_v40, %v1335_v12  ;;  %v3018_v17 = vpop.f32.mrb[38].mxu0 }
 0x2b0   : > { %v3287_v13 = vpop.eup %3286  ;;  %v1490_v14 = vadd.f32 1.0, %v3285_v6  ;;  %v4228_v15 = vpack.c.bf16 %v2040_v4, %v2039_v1  ;;  %v3053_v18 = vpop.f32.mrb[40].mxu1  ;;  %v2617_v35 = vmul.f32 -1.442695, %v1344_v11  ;;  %v1347_v36 = vadd.f32 %v3018_v17, %v4194_v40 }
 0x2b1   : > { %v3289_v29 = vpop.eup %3288  ;;  %3306 = vrcp.f32 %v1492_v7  ;;  %v1493_v33 = vadd.f32 1.0, %v3287_v13  ;;  %v1338_v41 = vpop.f32.mrb[39].mxu0  ;;  %v2615_v43 = vmul.f32 -1.442695, %v1336_v16 }
 0x2b2   : > { %v1940_v34 = vpop.f32.mrb[41].mxu1  ;;  %3308 = vrcp.f32 %v1490_v14  ;;  %v1491_v42 = vadd.f32 1.0, %v3289_v29  ;;  %v1339_v45 = vadd.f32 %v4194_v40, %v1338_v41  ;;  %v3291_v31 = vpop.eup %3290  ;;  %v2618_v47 = vmul.f32 -1.442695, %v1347_v36 }
 0x2b3   : > { %v3054_v46 = vpop.f32.mrb[42].mxu1  ;;  %3310 = vrcp.f32 %v1493_v33  ;;  %v3293_v50 = vpop.eup %3292  ;;  %v2045_v54 = vmul.f32 %v3291_v31, %v3053_v18 }
 0x2b4   : > { %v1943_v49 = vpop.f32.mrb[43].mxu1  ;;  %3312 = vrcp.f32 %v1491_v42  ;;  %v2616_v51 = vmul.f32 -1.442695, %v1339_v45  ;;  %v3295_v57 = vpop.eup %3294  ;;  %v2043_v58 = vmul.f32 %v3293_v50, %v1940_v34 }
 0x2b5   : > { %3314 = vpow2.f32 %v2617_v35  ;;  %v3297_v59 = vpop.eup %3296  ;;  %v2046_v60 = vmul.f32 %v3295_v57, %v3054_v46  ;;  %v3021_v61 = vpop.f32.mrb[40].mxu0 }
 0x2b6   : > { %3316 = vpow2.f32 %v2615_v43  ;;  %v3299_v62 = vpop.eup %3298  ;;  %v2044_v63 = vmul.f32 %v3297_v59, %v1943_v49  ;;  %v1360_v0 = vadd.f32 %v3021_v61, %v4194_v40  ;;  %v1351_v1 = vpop.f32.mrb[41].mxu0 }
 0x2b7   : > { %3318 = vpow2.f32 %v2618_v47  ;;  %v3301_v2 = vpop.eup %3300  ;;  %v1496_v3 = vadd.f32 1.0, %v3299_v62  ;;  %v4234_v52 = vpack.c.bf16 %v2046_v60, %v2045_v54  ;;  %v1352_v4 = vadd.f32 %v4194_v40, %v1351_v1  ;;  %v3022_v5 = vpop.f32.mrb[42].mxu0 }
 0x2b8   : > { %3320 = vpow2.f32 %v2616_v51  ;;  %v3057_v6 = vpop.f32.mrb[44].mxu1  ;;  %v3303_v7 = vpop.eup %3302  ;;  %v1494_v11 = vadd.f32 1.0, %v3301_v2  ;;  %v4237_v12 = vpack.c.bf16 %v2044_v63, %v2043_v58  ;;  %v1363_v13 = vadd.f32 %v3022_v5, %v4194_v40 }
 0x2b9   : > { %v1354_v14 = vpop.f32.mrb[43].mxu0  ;;  %v1956_v16 = vpop.f32.mrb[45].mxu1  ;;  %3322 = vrcp.f32 %v1496_v3  ;;  %v1497_v18 = vadd.f32 1.0, %v3303_v7  ;;  %v2621_v29 = vmul.f32 -1.442695, %v1360_v0 }
 0x2ba   : > { %v3305_v17 = vpop.eup %3304  ;;  %v1355_v33 = vadd.f32 %v4194_v40, %v1354_v14  ;;  %v3058_v35 = vpop.f32.mrb[46].mxu1  ;;  %3324 = vrcp.f32 %v1494_v11  ;;  %v2619_v34 = vmul.f32 -1.442695, %v1352_v4  ;;  %v2622_v45 = vmul.f32 -1.442695, %v1363_v13 }
 0x2bb   : > { %v3307_v36 = vpop.eup %3306  ;;  %v1495_v41 = vadd.f32 1.0, %v3305_v17  ;;  %v1959_v42 = vpop.f32.mrb[47].mxu1  ;;  %3326 = vrcp.f32 %v1497_v18 }
 0x2bc   : > { %v3309_v43 = vpop.eup %3308  ;;  %v2049_v46 = vmul.f32 %v3307_v36, %v3057_v6  ;;  %v2620_v47 = vmul.f32 -1.442695, %v1355_v33 }
 0x2bd   : > { %v3311_v31 = vpop.eup %3310  ;;  %3328 = vrcp.f32 %v1495_v41  ;;  %v2047_v49 = vmul.f32 %v3309_v43, %v1956_v16  ;;  %v3025_v54 = vpop.f32.mrb[44].mxu0 }
 0x2be   : > { %v3313_v50 = vpop.eup %3312  ;;  %3330 = vpow2.f32 %v2621_v29  ;;  %v2050_v51 = vmul.f32 %v3311_v31, %v3058_v35  ;;  %v1376_v59 = vadd.f32 %v3025_v54, %v4194_v40  ;;  %v1367_v60 = vpop.f32.mrb[45].mxu0 }
 0x2bf   : > { %v3315_v57 = vpop.eup %3314  ;;  %3332 = vpow2.f32 %v2619_v34  ;;  %v2048_v58 = vmul.f32 %v3313_v50, %v1959_v42  ;;  %v1368_v0 = vadd.f32 %v4194_v40, %v1367_v60  ;;  %v3026_v1 = vpop.f32.mrb[46].mxu0 }
 0x2c0   : > { %v3317_v61 = vpop.eup %3316  ;;  %v1500_v62 = vadd.f32 1.0, %v3315_v57  ;;  %3334 = vpow2.f32 %v2622_v45  ;;  %v4242_v63 = vpack.c.bf16 %v2050_v51, %v2049_v46  ;;  %v3061_v2 = vpop.f32.mrb[48].mxu1  ;;  %v2625_v14 = vmul.f32 -1.442695, %v1376_v59 }
 0x2c1   : > { %v3319_v3 = vpop.eup %3318  ;;  %v1498_v4 = vadd.f32 1.0, %v3317_v61  ;;  %3336 = vpow2.f32 %v2620_v47  ;;  %v4245_v5 = vpack.c.bf16 %v2048_v58, %v2047_v49  ;;  %v1370_v6 = vpop.f32.mrb[47].mxu0  ;;  %v1379_v16 = vadd.f32 %v3026_v1, %v4194_v40 }
 0x2c2   : > { %v1972_v7 = vpop.f32.mrb[49].mxu1  ;;  %v3321_v11 = vpop.eup %3320  ;;  %3338 = vrcp.f32 %v1500_v62  ;;  %v1501_v13 = vadd.f32 1.0, %v3319_v3  ;;  %v2623_v29 = vmul.f32 -1.442695, %v1368_v0  ;;  %v1371_v33 = vadd.f32 %v4194_v40, %v1370_v6 }
 0x2c3   : > { %v3062_v17 = vpop.f32.mrb[50].mxu1  ;;  %3340 = vrcp.f32 %v1498_v4  ;;  %v1499_v18 = vadd.f32 1.0, %v3321_v11  ;;  %v3323_v36 = vpop.eup %3322  ;;  %v2626_v41 = vmul.f32 -1.442695, %v1379_v16 }
 0x2c4   : > { %v1975_v35 = vpop.f32.mrb[51].mxu1  ;;  %3342 = vrcp.f32 %v1501_v13  ;;  %v3325_v34 = vpop.eup %3324  ;;  %v2624_v42 = vmul.f32 -1.442695, %v1371_v33  ;;  %v2053_v43 = vmul.f32 %v3323_v36, %v3061_v2 }
 0x2c5   : > { %3344 = vrcp.f32 %v1499_v18  ;;  %v3327_v45 = vpop.eup %3326  ;;  %v2051_v46 = vmul.f32 %v3325_v34, %v1972_v7 }
 0x2c6   : > { %3346 = vpow2.f32 %v2625_v14  ;;  %v2054_v47 = vmul.f32 %v3327_v45, %v3062_v17 }
 0x2c7   : > { %v3329_v31 = vpop.eup %3328  ;;  %3348 = vpow2.f32 %v2623_v29  ;;  %v3065_v51 = vpop.f32.mrb[52].mxu1 }
 0x2c8   : > { %v3331_v49 = vpop.eup %3330  ;;  %3350 = vpow2.f32 %v2626_v41  ;;  %v2052_v50 = vmul.f32 %v3329_v31, %v1975_v35  ;;  %v2076_v57 = vpack.c.bf16 %v2054_v47, %v2053_v43  ;;  %v1988_v58 = vpop.f32.mrb[53].mxu1 }
 0x2c9   : > { %v3333_v54 = vpop.eup %3332  ;;  %v1504_v40 = vadd.f32 1.0, %v3331_v49  ;;  %3352 = vpow2.f32 %v2624_v42  ;;  %v3066_v62 = vpop.f32.mrb[54].mxu1 }
 0x2ca   : > { %v3335_v59 = vpop.eup %3334  ;;  %v1502_v60 = vadd.f32 1.0, %v3333_v54  ;;  %v2075_v61 = vpack.c.bf16 %v2052_v50, %v2051_v46  ;;  %v1991_v2 = vpop.f32.mrb[55].mxu1 }
 0x2cb   : > { %v3337_v0 = vpop.eup %3336  ;;  %3354 = vrcp.f32 %v1504_v40  ;;  %v1505_v1 = vadd.f32 1.0, %v3335_v59 }
 0x2cc   : > { %v3339_v3 = vpop.eup %3338  ;;  %3356 = vrcp.f32 %v1502_v60  ;;  %v1503_v4 = vadd.f32 1.0, %v3337_v0  ;;  %2826 = vmatprep.subr.bf16.mxu0 %v2075_v61  ;;  %3095 = vmatprep.subr.bf16.mxu1 %v2075_v61 }
 0x2cd   : > { %v3341_v6 = vpop.eup %3340  ;;  %3358 = vrcp.f32 %v1505_v1  ;;  %v2057_v7 = vmul.f32 %v3339_v3, %v3065_v51  ;;  %2827 = vmatpush3.bf16.msra.mxu0 %v4220_v37  ;;  %3103 = vmatpush3.bf16.msra.mxu1 %v4220_v37 }
 0x2ce   : > { %v3343_v11 = vpop.eup %3342  ;;  %3360 = vrcp.f32 %v1503_v4  ;;  %v2055_v13 = vmul.f32 %v3341_v6, %v1988_v58  ;;  %2828 = vmatprep.subr.bf16.mxu0 %v2076_v57  ;;  %3096 = vmatprep.subr.bf16.mxu1 %v2076_v57 }
 0x2cf   : > { %v3345_v14 = vpop.eup %3344  ;;  %v2058_v16 = vmul.f32 %v3343_v11, %v3066_v62  ;;  %v3069_v29 = vpop.f32.mrb[56].mxu1 }
 0x2d0   : > { %v3347_v17 = vpop.eup %3346  ;;  %v2056_v18 = vmul.f32 %v3345_v14, %v1991_v2  ;;  %v2004_v41 = vpop.f32.mrb[57].mxu1 }
 0x2d1   : > { %v3349_v33 = vpop.eup %3348  ;;  %v1508_v35 = vadd.f32 1.0, %v3347_v17  ;;  %v2078_v36 = vpack.c.bf16 %v2058_v16, %v2057_v7  ;;  %2829 = vmatpush3.bf16.msra.mxu0 %v4217_v20  ;;  %3104 = vmatpush3.bf16.msra.mxu1 %v4217_v20  ;;  %v3070_v43 = vpop.f32.mrb[58].mxu1 }
 0x2d2   : > { %v3351_v34 = vpop.eup %3350  ;;  %v1506_v37 = vadd.f32 1.0, %v3349_v33  ;;  %v2077_v42 = vpack.c.bf16 %v2056_v18, %v2055_v13  ;;  %v2007_v31 = vpop.f32.mrb[59].mxu1  ;;  %v4262_v13 = vrot.slane %v4177_v25, %v1596_v24 }
 0x2d3   : > { %v3353_v45 = vpop.eup %3352  ;;  %3362 = vrcp.f32 %v1508_v35  ;;  %v1509_v46 = vadd.f32 1.0, %v3351_v34 }
 0x2d4   : > { %3364 = vrcp.f32 %v1506_v37  ;;  %v1507_v47 = vadd.f32 1.0, %v3353_v45  ;;  %2830 = vmatprep.subr.bf16.mxu0 %v2077_v42  ;;  %3097 = vmatprep.subr.bf16.mxu1 %v2077_v42  ;;  %vm1722_vm6 = vcmp.eq.s32.totalorder %v3965_v19, %v4262_v13  ;;  %vm1724_vm7 = vcmp.eq.s32.totalorder %v3968_v22, %v4262_v13 }
 0x2d5   : > { %v3355_v49 = vpop.eup %3354  ;;  %3366 = vrcp.f32 %v1509_v46  ;;  %2831 = vmatpush3.bf16.msra.mxu0 %v4228_v15  ;;  %3105 = vmatpush3.bf16.msra.mxu1 %v4228_v15  ;;  %vm1746_vm10 = vcmp.eq.s32.totalorder %v4075_v9, %v4262_v13  ;;  %vm1748_vm11 = vcmp.eq.s32.totalorder %v4078_v10, %v4262_v13  ;;  %vm2694_vm12 = vmpackc.low %vm1724_vm7, %vm1722_vm6  ;;  %vm1726_vm2 = vcmp.eq.s32.totalorder %v3972_v26, %v4262_v13 }
 0x2d6   : > { %v3357_v20 = vpop.eup %3356  ;;  %3368 = vrcp.f32 %v1507_v47  ;;  %v2061_v50 = vmul.f32 %v3355_v49, %v3069_v29  ;;  %2832 = vmatprep.subr.bf16.mxu0 %v2078_v36  ;;  %3098 = vmatprep.subr.bf16.mxu1 %v2078_v36  ;;  %vm2718_vm0 = vmpackc.low %vm1748_vm11, %vm1746_vm10  ;;  %vm1728_vm3 = vcmp.eq.s32.totalorder %v3975_v27, %v4262_v13  ;;  %vm1750_vm4 = vcmp.eq.s32.totalorder %v4094_v21, %v4262_v13  ;;  %v2724_v27 = vld [vmem:[%s516_s23] ss:$0 sm:$0xff] }
 0x2d7   : > { %v3359_v51 = vpop.eup %3358  ;;  %v2059_v54 = vmul.f32 %v3357_v20, %v2004_v41  ;;  %v3073_v58 = vpop.f32.mrb[60].mxu1  ;;  %vm1752_vm5 = vcmp.eq.s32.totalorder %v4097_v23, %v4262_v13  ;;  %vm1731_vm6 = vcmp.eq.s32.totalorder %v3978_v28, %v4182_v38  ;;  %vm1733_vm7 = vcmp.eq.s32.totalorder %v3984_v30, %v4182_v38  ;;  %vm2698_vm8 = vmpackc.low %vm1728_vm3, %vm1726_vm2 }
 0x2d8   : > { %v3361_v40 = vpop.eup %3360  ;;  %v2062_v57 = vmul.f32 %v3359_v51, %v3070_v43  ;;  %v2020_v60 = vpop.f32.mrb[61].mxu1  ;;  %vm2722_vm9 = vmpackc.low %vm1752_vm5, %vm1750_vm4  ;;  %vm1730_vm11 = vcmp.eq.s32.totalorder %v3978_v28, %v4262_v13  ;;  %vm1736_vm2 = vcmp.eq.s32.totalorder %v4013_v44, %v4262_v13  ;;  %vm1739_vm3 = vcmp.eq.s32.totalorder %v4016_v48, %v4182_v38 }
 0x2d9   : > { %v2060_v59 = vmul.f32 %v3361_v40, %v2007_v31  ;;  %2833 = vmatpush3.bf16.msra.mxu0 %v4225_v8  ;;  %3106 = vmatpush3.bf16.msra.mxu1 %v4225_v8  ;;  %v3074_v62 = vpop.f32.mrb[62].mxu1  ;;  %vm2700_vm10 = vmpackc.low %vm1733_vm7, %vm1731_vm6  ;;  %vm1741_vm4 = vcmp.eq.s32.totalorder %v4030_v53, %v4182_v38  ;;  %vm1738_vm7 = vcmp.eq.s32.totalorder %v4016_v48, %v4262_v13 }
 0x2da   : > { %v2080_v61 = vpack.c.bf16 %v2062_v57, %v2061_v50  ;;  %v2023_v15 = vpop.f32.mrb[63].mxu1  ;;  %vm2708_vm6 = vmpackc.low %vm1741_vm4, %vm1739_vm3 }
 0x2db   : > { %v2079_v0 = vpack.c.bf16 %v2060_v59, %v2059_v54 }
 0x2dd   : > { %v3363_v1 = vpop.eup %3362  ;;  %2834 = vmatprep.subr.bf16.mxu0 %v2079_v0  ;;  %3099 = vmatprep.subr.bf16.mxu1 %v2079_v0 }
 0x2de   : > { %v3365_v2 = vpop.eup %3364  ;;  %v2065_v3 = vmul.f32 %v3363_v1, %v3073_v58  ;;  %2835 = vmatpush3.bf16.msra.mxu0 %v4237_v12  ;;  %3107 = vmatpush3.bf16.msra.mxu1 %v4237_v12 }
 0x2df   : > { %v3367_v4 = vpop.eup %3366  ;;  %v2063_v6 = vmul.f32 %v3365_v2, %v2020_v60  ;;  %2836 = vmatprep.subr.bf16.mxu0 %v2080_v61  ;;  %3100 = vmatprep.subr.bf16.mxu1 %v2080_v61 }
 0x2e0   : > { %v3369_v7 = vpop.eup %3368  ;;  %v2066_v8 = vmul.f32 %v3367_v4, %v3074_v62 }
 0x2e1   : > { %v2064_v11 = vmul.f32 %v3369_v7, %v2023_v15 }
 0x2e2   : > { %v2082_v14 = vpack.c.bf16 %v2066_v8, %v2065_v3  ;;  %2837 = vmatpush3.bf16.msra.mxu0 %v4234_v52  ;;  %3108 = vmatpush3.bf16.msra.mxu1 %v4234_v52 }
 0x2e3   : > { %v2081_v16 = vpack.c.bf16 %v2064_v11, %v2063_v6 }
 0x2e5   : > { %2838 = vmatprep.subr.bf16.mxu0 %v2081_v16  ;;  %3101 = vmatprep.subr.bf16.mxu1 %v2081_v16 }
 0x2e6   : > { %2839 = vmatpush3.bf16.msra.mxu0 %v4245_v5  ;;  %3109 = vmatpush3.bf16.msra.mxu1 %v4245_v5 }
 0x2e7   : > { %2840 = vmatprep.subr.bf16.mxu0 %v2082_v14  ;;  %3102 = vmatprep.subr.bf16.mxu1 %v2082_v14 }
 0x2ea   : > { %2841 = vmatpush3.bf16.msra.mxu0 %v4242_v63  ;;  %3110 = vmatpush3.bf16.msra.mxu1 %v4242_v63 }
 0x2ed   : > { %2695 = vmatmul.mubr.msk.bf16.vlgmr.msra.gmra.mrb[48].mxu0 %vm2694_vm12, %v3610_v39  ;;  %2719 = vmatmul.mubr.msk.bf16.vlgmr.msra.gmra.mrb[64].mxu1 %vm2718_vm0, %v3610_v39  ;;  %vm1732_vm12 = vcmp.eq.s32.totalorder %v3984_v30, %v4262_v13  ;;  %vm2704_vm0 = vmpackc.low %vm1737_vm14, %vm1735_vm13  ;;  %vm1742_vm13 = vcmp.eq.s32.totalorder %v4033_v55, %v4262_v13  ;;  %vm1744_vm14 = vcmp.eq.s32.totalorder %v4036_v56, %v4262_v13 }
 0x2ee   : > { %2697 = vmatprep.mubr.msk.bf16.mxu0 %vm2696_vm15, %v3610_v39  ;;  %2721 = vmatprep.mubr.msk.bf16.mxu1 %vm2720_vm1, %v3610_v39  ;;  %vm2702_vm15 = vmpackc.low %vm1732_vm12, %vm1730_vm11  ;;  %vm1734_vm1 = vcmp.eq.s32.totalorder %v3991_v32, %v4262_v13 }
 0x2ef   : > { %vm2706_vm5 = vmpackc.low %vm1736_vm2, %vm1734_vm1 }
 0x2f5   : > { %2699 = vmatmul.mubr.msk.bf16.gmra.mrb[52].mxu0 %vm2698_vm8, %v3610_v39  ;;  %2723 = vmatmul.mubr.msk.bf16.gmra.mrb[68].mxu1 %vm2722_vm9, %v3610_v39  ;;  %vm1740_vm8 = vcmp.eq.s32.totalorder %v4030_v53, %v4262_v13  ;;  %vm1743_vm9 = vcmp.eq.s32.totalorder %v4033_v55, %v4182_v38 }
 0x2f6   : > { %2701 = vmatprep.mubr.msk.bf16.mxu0 %vm2700_vm10, %v3610_v39  ;;  %vm1745_vm10 = vcmp.eq.s32.totalorder %v4036_v56, %v4182_v38  ;;  %vm2710_vm11 = vmpackc.low %vm1740_vm8, %vm1738_vm7 }
 0x2f7   : > { %vm2712_vm12 = vmpackc.low %vm1745_vm10, %vm1743_vm9 }
 0x2fd   : > { %2703 = vmatmul.mubr.msk.bf16.gmra.mrb[56].mxu0 %vm2702_vm15, %v3610_v39  ;;  %vm2714_vm15 = vmpackc.low %vm1744_vm14, %vm1742_vm13 }
 0x2fe   : > { %2705 = vmatprep.mubr.msk.bf16.mxu0 %vm2704_vm0, %v3610_v39 }
 0x305   : > { %2707 = vmatmul.mubr.msk.bf16.gmra.mrb[60].mxu0 %vm2706_vm5, %v3610_v39 }
 0x306   : > { %2709 = vmatprep.mubr.msk.bf16.mxu0 %vm2708_vm6, %v3610_v39 }
 0x30d   : > { %2711 = vmatmul.mubr.msk.bf16.gmra.mrb[64].mxu0 %vm2710_vm11, %v3610_v39 }
 0x30e   : > { %2713 = vmatprep.mubr.msk.bf16.mxu0 %vm2712_vm12, %v3610_v39 }
 0x315   : > { %2715 = vmatmul.mubr.msk.bf16.gmra.mrb[68].mxu0 %vm2714_vm15, %v3610_v39 }
 0x3c0   : > { %v2842_v22 = vpop.f32.mrb[48].mxu0  ;;  %v2878_v24 = vpop.f32.mrb[64].mxu1 }
 0x3c1   : > { %v2843_v26 = vpop.f32.mrb[49].mxu0  ;;  %v2879_v28 = vpop.f32.mrb[65].mxu1 }
 0x3c2   : > { %v2844_v30 = vadd.f32 %v2843_v26, %v2842_v22  ;;  %v2845_v32 = vpop.f32.mrb[50].mxu0  ;;  %v2880_v44 = vadd.f32 %v2879_v28, %v2878_v24  ;;  %v2881_v48 = vpop.f32.mrb[66].mxu1 }
 0x3c3   : > { %v2846_v53 = vpop.f32.mrb[51].mxu0  ;;  %v2882_v55 = vpop.f32.mrb[67].mxu1 }
 0x3c4   : > { %v4345_v9 = vadd.f32 %v2844_v30, %v2724_v27  ;;  %v2847_v56 = vadd.f32 %v2846_v53, %v2845_v32  ;;  %v4347_v10 = vadd.f32 %v2880_v44, %v2724_v27  ;;  %v2883_v21 = vadd.f32 %v2882_v55, %v2881_v48 }
 0x3c6   : > { %v4349_v23 = vadd.f32 %v2847_v56, %v2724_v27  ;;  %v4351_v25 = vadd.f32 %v2883_v21, %v2724_v27  ;;  %v2274_v26 = vmax.f32 (!%p2725_p8), %v4345_v9, 0.0 }
 0x3c8   : > { %v2848_v38 = vpop.f32.mrb[52].mxu0  ;;  %v2884_v39 = vpop.f32.mrb[68].mxu1  ;;  %v2275_v28 = vmax.f32 (!%p2725_p8), %v4349_v23, 0.0 }
 0x3c9   : > { %v2849_v52 = vpop.f32.mrb[53].mxu0  ;;  %v2885_v12 = vpop.f32.mrb[69].mxu1 }
 0x3ca   : > { %v2850_v63 = vadd.f32 %v2849_v52, %v2848_v38  ;;  %v2851_v5 = vpop.f32.mrb[54].mxu0  ;;  %v2886_v17 = vadd.f32 %v2885_v12, %v2884_v39  ;;  %v2887_v18 = vpop.f32.mrb[70].mxu1 }
 0x3cb   : > { %v2852_v29 = vpop.f32.mrb[55].mxu0  ;;  %v2888_v33 = vpop.f32.mrb[71].mxu1 }
 0x3cc   : > { %v4353_v35 = vadd.f32 %v2850_v63, %v2724_v27  ;;  %v2853_v36 = vadd.f32 %v2852_v29, %v2851_v5  ;;  %v4355_v41 = vadd.f32 %v2886_v17, %v2724_v27  ;;  %v2889_v34 = vadd.f32 %v2888_v33, %v2887_v18 }
 0x3cd   : > { %v2286_v17 = vmax.f32 (!%p2725_p8), %v4347_v10, 0.0  ;;  %v2287_v18 = vmax.f32 (!%p2725_p8), %v4351_v25, 0.0 }
 0x3ce   : > { %v4357_v37 = vadd.f32 %v2853_v36, %v2724_v27  ;;  %v4359_v42 = vadd.f32 %v2889_v34, %v2724_v27  ;;  %v2276_v30 = vmax.f32 (!%p2725_p8), %v4353_v35, 0.0  ;;  %v2288_v29 = vmax.f32 (!%p2725_p8), %v4355_v41, 0.0 }
 0x3cf   : > { %v2296_v34 = vpack.c.bf16 (!%p2725_p8), %v2287_v18, %v2286_v17 }
 0x3d0   : > { %v2854_v43 = vpop.f32.mrb[56].mxu0  ;;  %v2277_v32 = vmax.f32 (!%p2725_p8), %v4357_v37, 0.0  ;;  %v2289_v36 = vmax.f32 (!%p2725_p8), %v4359_v42, 0.0 }
 0x3d1   : > { %v2855_v45 = vpop.f32.mrb[57].mxu0  ;;  %2304 = vst [vmem:[#allocation2 + $0x30] sm:$0xff] (!%p2725_p8), %v2296_v34 }
 0x3d2   : > { %v2856_v46 = vadd.f32 %v2855_v45, %v2854_v43  ;;  %v2857_v31 = vpop.f32.mrb[58].mxu0  ;;  %v2291_v56 = vpack.c.bf16 (!%p2725_p8), %v2277_v32, %v2276_v30  ;;  %v2297_v43 = vpack.c.bf16 (!%p2725_p8), %v2289_v36, %v2288_v29 }
 0x3d3   : > { %v2858_v47 = vpop.f32.mrb[59].mxu0 }
 0x3d4   : > { %v4361_v49 = vadd.f32 %v2856_v46, %v2724_v27  ;;  %v2859_v20 = vadd.f32 %v2858_v47, %v2857_v31  ;;  %2299 = vst [vmem:[#allocation2 + $0x8] sm:$0xff] (!%p2725_p8), %v2291_v56  ;;  %2305 = vst [vmem:[#allocation2 + $0x38] sm:$0xff] (!%p2725_p8), %v2297_v43 }
 0x3d6   : > { %v4363_v50 = vadd.f32 %v2859_v20, %v2724_v27  ;;  %v2278_v44 = vmax.f32 (!%p2725_p8), %v4361_v49, 0.0 }
 0x3d8   : > { %v2860_v51 = vpop.f32.mrb[60].mxu0  ;;  %v2279_v48 = vmax.f32 (!%p2725_p8), %v4363_v50, 0.0 }
 0x3d9   : > { %v2861_v54 = vpop.f32.mrb[61].mxu0 }
 0x3da   : > { %v2862_v40 = vadd.f32 %v2861_v54, %v2860_v51  ;;  %v2863_v57 = vpop.f32.mrb[62].mxu0  ;;  %v2292_v39 = vpack.c.bf16 (!%p2725_p8), %v2279_v48, %v2278_v44 }
 0x3db   : > { %v2864_v58 = vpop.f32.mrb[63].mxu0 }
 0x3dc   : > { %v4365_v59 = vadd.f32 %v2862_v40, %v2724_v27  ;;  %v2865_v60 = vadd.f32 %v2864_v58, %v2863_v57  ;;  %2300 = vst [vmem:[#allocation2 + $0x10] sm:$0xff] (!%p2725_p8), %v2292_v39 }
 0x3de   : > { %v4367_v61 = vadd.f32 %v2865_v60, %v2724_v27  ;;  %v2280_v53 = vmax.f32 (!%p2725_p8), %v4365_v59, 0.0 }
 0x3e0   : > { %v2866_v62 = vpop.f32.mrb[64].mxu0  ;;  %v2281_v55 = vmax.f32 (!%p2725_p8), %v4367_v61, 0.0 }
 0x3e1   : > { %v2867_v0 = vpop.f32.mrb[65].mxu0 }
 0x3e2   : > { %v2868_v15 = vadd.f32 %v2867_v0, %v2866_v62  ;;  %v2869_v1 = vpop.f32.mrb[66].mxu0  ;;  %v2293_v52 = vpack.c.bf16 (!%p2725_p8), %v2281_v55, %v2280_v53 }
 0x3e3   : > { %v2870_v2 = vpop.f32.mrb[67].mxu0 }
 0x3e4   : > { %v4369_v3 = vadd.f32 %v2868_v15, %v2724_v27  ;;  %v2871_v4 = vadd.f32 %v2870_v2, %v2869_v1  ;;  %2301 = vst [vmem:[#allocation2 + $0x18] sm:$0xff] (!%p2725_p8), %v2293_v52 }
 0x3e6   : > { %v4371_v6 = vadd.f32 %v2871_v4, %v2724_v27  ;;  %v2282_v21 = vmax.f32 (!%p2725_p8), %v4369_v3, 0.0 }
 0x3e8   : > { %v2872_v7 = vpop.f32.mrb[68].mxu0  ;;  %2273 = sbr.rel (%p2725_p8) target bundleno = 1013 (0x3f5), region = 93  ;;  %v2283_v38 = vmax.f32 (!%p2725_p8), %v4371_v6, 0.0 }
 0x3e9   : > { %v2873_v8 = vpop.f32.mrb[69].mxu0 }
 0x3ea   : > { %v2874_v11 = vadd.f32 %v2873_v8, %v2872_v7  ;;  %v2875_v13 = vpop.f32.mrb[70].mxu0  ;;  %v2294_v5 = vpack.c.bf16 (!%p2725_p8), %v2283_v38, %v2282_v21 }
 0x3eb   : > { %v2876_v14 = vpop.f32.mrb[71].mxu0 }
 0x3ec   : > { %v2264_v16 = vadd.f32 %v2874_v11, %v2724_v27  ;;  %v2877_v22 = vadd.f32 %v2876_v14, %v2875_v13  ;;  %2302 = vst [vmem:[#allocation2 + $0x20] sm:$0xff] (!%p2725_p8), %v2294_v5 }
 0x3ee   : > { %v2265_v24 = vadd.f32 %v2877_v22, %v2724_v27  ;;  %v2290_v27 = vpack.c.bf16 (!%p2725_p8), %v2275_v28, %v2274_v26  ;;  %v2284_v12 = vmax.f32 (!%p2725_p8), %v2264_v16, 0.0 }
 0x3f0   : > { %v2285_v63 = vmax.f32 %v2265_v24, 0.0  ;;  %2298 = vst [vmem:[#allocation2] sm:$0xff] %v2290_v27 }
 0x3f2   : > { %v2295_v33 = vpack.c.bf16 %v2285_v63, %v2284_v12 }
 0x3f4   : > { %2303 = vst [vmem:[#allocation2 + $0x28] sm:$0xff] %v2295_v33 }
 0x3f5 PF: > { %p2726_p5 = scmp.ne.s32.totalorder %s3592_s16, 2 }
 0x3f6   : > { %v2319_v45 = vpack.c.bf16 (!%p2726_p5), %v4349_v23, %v4345_v9  ;;  %v3611_v46 = vmov (!%p2726_p5), 0.0   ;;  %v2320_v31 = vpack.c.bf16 (!%p2726_p5), %v4357_v37, %v4353_v35  ;;  %vm3612_vm0 = vmmov (!%p2726_p5), 0   ;;  %s4501_s23 = sld [smem:[#allocation28_spill]] (!%p2726_p5) }
 0x3f7   : > { %2309 = sbr.rel (%p2726_p5) target bundleno = 1262 (0x4ee), region = 97  ;;  %3075 = vmatprep.subr.bf16.mxu0 (!%p2726_p5), %v3611_v46  ;;  %3091 = vmatprep.mubr.msk.bf16.mxu0 (!%p2726_p5), %vm3612_vm0, %v3611_v46  ;;  %v2321_v47 = vpack.c.bf16 (!%p2726_p5), %v4363_v50, %v4361_v49  ;;  %v2322_v20 = vpack.c.bf16 (!%p2726_p5), %v4367_v61, %v4365_v59  ;;  %v2323_v9 = vpack.c.bf16 (!%p2726_p5), %v4371_v6, %v4369_v3  ;;  %v3613_v50 = vmov (!%p2726_p5), 1.0|1.0  }
 0x3f8   : > { %3076 = vmatpush3.bf16.msra.mxu0 (!%p2726_p5), %v2319_v45  ;;  %v2324_v23 = vpack.c.bf16 (!%p2726_p5), %v2265_v24, %v2264_v16  ;;  %v2325_v35 = vpack.c.bf16 (!%p2726_p5), %v4351_v25, %v4347_v10  ;;  %v2326_v49 = vpack.c.bf16 (!%p2726_p5), %v4359_v42, %v4355_v41 }
 0x3f9   : > { %3077 = vmatprep.subr.bf16.mxu0 (!%p2726_p5), %v3611_v46 }
 0x3fc   : > { %3078 = vmatpush3.bf16.msra.mxu0 (!%p2726_p5), %v2320_v31  ;;  %v2727_v37 = vld [vmem:[%s4501_s23] ss:$0 sm:$0xff] (!%p2726_p5) }
 0x3fd   : > { %3079 = vmatprep.subr.bf16.mxu0 (!%p2726_p5), %v3611_v46  ;;  %vm2315_vm1 = vcmp.eq.s32.totalorder (!%p2726_p5), %v3965_v19, %v2727_v37 }
 0x3fe   : > { %vm2729_vm2 = vmpackc.low %vm2315_vm1, %vm2315_vm1 }
 0x400   : > { %3080 = vmatpush3.bf16.msra.mxu0 %v2321_v47 }
 0x401   : > { %3081 = vmatprep.subr.bf16.mxu0 %v3611_v46 }
 0x404   : > { %3082 = vmatpush3.bf16.msra.mxu0 %v2322_v20 }
 0x405   : > { %3083 = vmatprep.subr.bf16.mxu0 %v3611_v46 }
 0x408   : > { %3084 = vmatpush3.bf16.msra.mxu0 %v2323_v9 }
 0x409   : > { %3085 = vmatprep.subr.bf16.mxu0 %v3611_v46 }
 0x40c   : > { %3086 = vmatpush3.bf16.msra.mxu0 %v2324_v23 }
 0x40d   : > { %3087 = vmatprep.subr.bf16.mxu0 %v3611_v46 }
 0x410   : > { %3088 = vmatpush3.bf16.msra.mxu0 %v2325_v35 }
 0x411   : > { %3089 = vmatprep.subr.bf16.mxu0 %v3611_v46 }
 0x414   : > { %3090 = vmatpush3.bf16.msra.mxu0 %v2326_v49 }
 0x417   : > { %3092 = vmatmul.mubr.msk.bf16.vlgmr.msra.gmra.mrb[0].mxu0 %vm2729_vm2, %v3613_v50 }
 0x4ea   : > { %v2361_v51 = vpop.f32.mrb[0].mxu0 }
 0x4eb   : > { %2367 = vst [vmem:[#allocation13] sm:$0xff] %v2361_v51  ;;  %v3093_v54 = vpop.f32.mrb[1].mxu0 }
 0x4ec   : > { %v2364_v10 = vpop.f32.mrb[2].mxu0 }
 0x4ed   : > { %v3094_v25 = vpop.f32.mrb[3].mxu0 }
 0x4ee PF: > { %p3142_p11 = scmp.eq.s32.totalorder %s3775_s11, 2  ;;  %s3614_s21 = smov [#allocation13]  }
 0x4ef   : > { %s2375_s10 = sshll.u32 %s3614_s21, 4  ;;  %s2376_s10 = int_to_ptr.vmem [resolvable:$true] %s2375_s10 }
 0x4f0   : > { %s3510_s18 = scalar_lea.vmem %s2376_s10, 128  ;;  %p3517_p7 = scmp.lt.s32.totalorder %s2376_s10, %s2376_s10 }
 0x4f1   : > { %p3511_p0 = scmp.ne.s32.totalorder %s2376_s10, %s3510_s18  ;;  %p3518_p9 = scmp.lt.s32.totalorder %s3510_s18, %s3510_s18 }
 0x4f3   : > { %p3512_p1 = pnand %p3511_p0, %p3142_p11  ;;  %p3519_p12 = por %p3518_p9, %p3517_p7 }
 0x4f5   : > { %p3513_p4 = pneg %p3512_p1 }
 0x4f7   : > { %p3520_p10 = pnand %p3519_p12, %p3513_p4 }
 0x4f9   : > { %3523 = shalt.err (!%p3520_p10)
}
 0x4fa   : > { %s4502_s27 = sld [smem:[#allocation31_spill]] }
 0x500   : > { %s3524_s3 = scalar_lea.hbm %s4502_s27, 128 }
 0x501   : > { %p3525_p6 = scmp.ne.s32.totalorder %s4502_s27, %s3524_s3  ;;  %p3530_p2 = scmp.lt.u32.totalorder %s3524_s3, %s4502_s27 }
 0x503   : > { %p3526_p13 = pnand %p3525_p6, %p3142_p11 }
 0x505   : > { %p3527_p3 = pneg %p3526_p13 }
 0x507   : > { %p3532_p8 = pnand %p3530_p2, %p3527_p3 }
 0x509   : > { %3535 = shalt.err (!%p3532_p8)
}
 0x50a   : > { %3122 = dma.vmem_to_hbm [thread:$0]  (%p3142_p11), %s2376_s10, 128, %s4502_s27, [#allocation7]  }
 0x50b   : > { %3575 = dma.done.wait (%p3142_p11), [#allocation7], 128  }
 0x50c   : > { %3577 = vsyncadd (%p3142_p11), [#allocation7], 4294967168 }
 0x50d PF: > { %s4503_s22 = sld [smem:[#allocation25_spill]]  ;;  %s4504_s4 = sld [smem:[#allocation27_spill]] }
 0x50e   : > { %s4505_s16 = sld [smem:[#allocation24_spill]]  ;;  %s4506_s17 = sld [smem:[#allocation26_spill]] }
 0x50f   : > { %s4507_s13 = smov %s3584_s14  ;;  %s4508_s14 = smov %s3588_s15 }
 0x513   : > { %s28_s18 = sadd.s32 1, %s4503_s22   ;;  %s4509_s15 = smov %s4504_s4 }
 0x514   : > { %p25_p5 = scmp.ge.s32.totalorder %s28_s18, 5  }
 0x516   :  { %27 = sbr.rel (!%p25_p5) target bundleno = 13 (0xd), region = 161 }
 0x51d   :  { %2388 = vsyncpa [#allocation6], 1 }
 0x51e   :  { %2390 = vsyncpa [#allocation6 + $0x1], 1 }
 0x51f   :  { %2391 = vsyncpa [#allocation9], 1 }
 0x520   :  { %2393 = vsyncpa [#allocation9 + $0x1], 1 }
 0x521   :  { %2394 = vsyncpa [#allocation12], 1 }
 0x522   :  { %2396 = vsyncpa [#allocation12 + $0x1], 1 }
 0x523   :  { %2397 = vsyncpa [#allocation7], 1 }
 0x524   :  { %2399 = vsyncpa [#allocation7 + $0x1], 1 }

</bundles_post_ra>
